<compile_context>
chip_gen: v7x
topology: tpu7x:2x2x1
jax: 0.10.0
libtpu: 0.0.40
codegen_flags: <defaults>
</compile_context>

<pallas_src>
import jax
import jax.numpy as jnp
from jax import lax
from jax.experimental import pallas as pl
from jax.experimental.pallas import tpu as pltpu

# ----------------------------- configuration -----------------------------
BATCH = 2
INPUT_DIM = 4
SEQ_LEN = 8
HIDDEN_DIM = 32
LSTM_LAYERS = 2
LINEAR_LAYERS = [16, 8]          # -> linear_dims = [32, 16, 8]
B_PAD = 8                        # pad batch to sublane width for full tiles
GATES = 4 * HIDDEN_DIM           # 128 (also used as the lane-padded width)

# Row offsets inside the packed bf16 weight slab (all bf16-tile aligned).
R_WIH0 = 0                       # (D, 4H), padded to 16 rows
R_WHH0 = 16                      # (H, 4H)
R_W1 = R_WHH0 + HIDDEN_DIM       # (2H, 4H) = [wih1 ; whh1]
R_WL0 = R_W1 + 2 * HIDDEN_DIM    # (H, 128), valid cols 0:16
R_WL1 = R_WL0 + HIDDEN_DIM       # (128, 128), valid block [0:16, 0:8]
R_END = R_WL1 + GATES            # 272 rows total

# Row offsets inside the f32 bias slab.
M_B0, M_B1, M_BL0, M_BL1, M_END = 0, 8, 16, 24, 32


# ------------------------------- kernel ----------------------------------
def lstm_mlp_kernel(x2d_ref,      # (T*B_PAD, D) f32
                    w_ref,        # (R_END, 128) bf16 packed weights
                    misc_ref,     # (M_END, 128) f32 packed biases
                    out_ref):     # (B_PAD, 128) f32
    H = HIDDEN_DIM
    T = SEQ_LEN
    BP = B_PAD
    f32 = jnp.float32
    bf16 = jnp.bfloat16

    # ----- hoisted constants & loop-invariant weight views -----------------
    lane = lax.broadcasted_iota(jnp.int32, (BP, GATES), 1)
    is_g = (lane >= 2 * H) & (lane < 3 * H)
    gate_scale = jnp.where(is_g, f32(1.0), f32(0.5))     # 0.5 on i/f/o lanes
    gate_offset = jnp.where(is_g, f32(0.0), f32(0.5))    # sigmoid reconstruction

    wih0 = w_ref[R_WIH0:R_WIH0 + INPUT_DIM, :]            # (D, 4H)
    whh0 = w_ref[R_WHH0:R_WHH0 + H, :]                    # (H, 4H)
    w1 = w_ref[R_W1:R_W1 + 2 * H, :]                      # (2H, 4H)
    wl0 = w_ref[R_WL0:R_WL0 + H, :]                       # (H, 128)
    wl1 = w_ref[R_WL1:R_WL1 + GATES, :]                   # (128, 128)

    b0 = misc_ref[M_B0:M_B0 + 1, :]                        # (1, 4H)
    b1b = jnp.broadcast_to(misc_ref[M_B1:M_B1 + 1, :], (BP, GATES))  # hoisted
    bl0 = misc_ref[M_BL0:M_BL0 + 1, :]
    bl1 = misc_ref[M_BL1:M_BL1 + 1, :]

    def cell(gates, c_prev):
        # One tanh over the full gate vreg; sigmoid(z) = 0.5*(tanh(z/2)+1).
        t = jnp.tanh(gates * gate_scale)
        a = t * gate_scale + gate_offset
        i = a[:, 0 * H:1 * H]
        f = a[:, 1 * H:2 * H]
        g = a[:, 2 * H:3 * H]
        o = a[:, 3 * H:4 * H]
        c_new = f * c_prev + i * g
        h_new = o * jnp.tanh(c_new)
        return h_new, c_new

    # ----- layer-0 input gates hoisted: one (T*BP, D) @ (D, 4H) matmul -----
    gx0 = jnp.dot(x2d_ref[...].astype(bf16), wih0,
                  preferred_element_type=f32) + b0         # (T*BP, 4H)

    # ----- interleaved two-layer recurrence (fully unrolled, T+1 stages) ---
    zeros = jnp.zeros((BP, H), f32)
    h0, c0, h1, c1 = zeros, zeros, zeros, zeros
    for t in range(T + 1):
        h0_prev = h0                      # layer-0 output of step t-1
        if t < T:                         # layer-0 step t
            g0 = gx0[t * BP:(t + 1) * BP, :] + jnp.dot(
                h0_prev.astype(bf16), whh0, preferred_element_type=f32)
            h0, c0 = cell(g0, c0)
        if t >= 1:                        # layer-1 step t-1 (consumes hs0[t-1])
            hcat = jnp.concatenate([h0_prev, h1], axis=1).astype(bf16)  # (BP,2H)
            g1 = jnp.dot(hcat, w1, preferred_element_type=f32) + b1b
            h1, c1 = cell(g1, c1)
    # h1 == h_n of the last LSTM layer.

    # ----- linear stack: Linear + ReLU (h_activ), Linear (no activation) ----
    z = jnp.maximum(
        jnp.dot(h1.astype(bf16), wl0, preferred_element_type=f32) + bl0, 0.0)
    logits = jnp.dot(z.astype(bf16), wl1,
                     preferred_element_type=f32) + bl1      # (BP, 128)

    # ----- Softmax(dim=1) on (1,B,O) == softmax over the batch axis ---------
    # Padded batch rows are masked out of max/sum; lane-padded columns are all
    # zero so they produce a harmless uniform softmax (sliced off in wrapper).
    row = lax.broadcasted_iota(jnp.int32, (BP, GATES), 0)
    valid = row < BATCH
    masked = jnp.where(valid, logits, f32(-1e30))
    m = jnp.max(masked, axis=0, keepdims=True)
    e = jnp.where(valid, jnp.exp(masked - m), f32(0.0))
    s = jnp.sum(e, axis=0, keepdims=True)
    out_ref[...] = e / s


# ------------------------------- wrapper ----------------------------------
def init_params(key):
    """Deterministic parameter init with PyTorch-shaped tensors."""
    H, D = HIDDEN_DIM, INPUT_DIM
    dims = [H] + LINEAR_LAYERS
    keys = jax.random.split(key, 4 * LSTM_LAYERS + 2 * len(LINEAR_LAYERS))
    ki = iter(keys)

    def u(k, shape, scale=0.1):
        return jax.random.uniform(k, shape, jnp.float32, -scale, scale)

    params = {"lstm": [], "linear": []}
    for layer in range(LSTM_LAYERS):
        in_dim = D if layer == 0 else H
        params["lstm"].append(dict(
            weight_ih=u(next(ki), (4 * H, in_dim)),
            weight_hh=u(next(ki), (4 * H, H)),
            bias_ih=u(next(ki), (4 * H,)),
            bias_hh=u(next(ki), (4 * H,)),
        ))
    for idx in range(len(LINEAR_LAYERS)):
        params["linear"].append(dict(
            weight=u(next(ki), (dims[idx + 1], dims[idx])),
            bias=u(next(ki), (dims[idx + 1],)),
        ))
    return params


def _pad_rows(a, rows):
    return jnp.pad(a, ((0, rows - a.shape[0]), (0, 0)))


def prepare_params(params):
    """One-time weight preprocessing: transposes, bias fusion, bf16 cast and
    packing into two lane-width-128 slabs (done once, outside the jit)."""
    H = HIDDEN_DIM
    l0, l1 = params["lstm"]
    lin0, lin1 = params["linear"]

    wih0 = l0["weight_ih"].T                                   # (D, 4H)
    whh0 = l0["weight_hh"].T                                   # (H, 4H)
    w1cat = jnp.concatenate([l1["weight_ih"].T,                # (2H, 4H)
                             l1["weight_hh"].T], axis=0)
    wl0 = lin0["weight"].T                                     # (H, 16)
    wl1 = lin1["weight"].T                                     # (16, 8)
    wl0_p = jnp.pad(wl0, ((0, 0), (0, GATES - wl0.shape[1])))  # (H, 128)
    wl1_p = jnp.pad(wl1, ((0, GATES - wl1.shape[0]),
                          (0, GATES - wl1.shape[1])))          # (128, 128)

    wslab = jnp.concatenate([
        _pad_rows(wih0, R_WHH0 - R_WIH0),   # rows   0: 16 (valid 0:D)
        whh0,                               # rows  16: 48
        w1cat,                              # rows  48:112
        wl0_p,                              # rows 112:144
        wl1_p,                              # rows 144:272
    ], axis=0).astype(jnp.bfloat16)
    assert wslab.shape == (R_END, GATES), wslab.shape

    b0 = (l0["bias_ih"] + l0["bias_hh"])[None, :]              # (1, 4H)
    b1 = (l1["bias_ih"] + l1["bias_hh"])[None, :]
    bl0 = jnp.pad(lin0["bias"][None, :],
                  ((0, 0), (0, GATES - lin0["bias"].shape[0])))
    bl1 = jnp.pad(lin1["bias"][None, :],
                  ((0, 0), (0, GATES - lin1["bias"].shape[0])))
    misc = jnp.concatenate([
        _pad_rows(b0, 8), _pad_rows(b1, 8),
        _pad_rows(bl0, 8), _pad_rows(bl1, 8),
    ], axis=0).astype(jnp.float32)
    assert misc.shape == (M_END, GATES), misc.shape

    return dict(wslab=wslab, misc=misc)


@jax.jit
def lstm_network_forward(x, wslab, misc):
    """x: (B, input_dim, seq_len) -> (B, LINEAR_LAYERS[-1])."""
    B, D, T = x.shape
    O = LINEAR_LAYERS[-1]

    # Tiny layout prep (64 elements); fused by XLA into one copy around the
    # kernel: (B,D,T) -> (T,B,D) -> pad batch to B_PAD -> (T*B_PAD, D).
    x_seq = jnp.transpose(x, (2, 0, 1)).astype(jnp.float32)
    x_pad = jnp.pad(x_seq, ((0, 0), (0, B_PAD - B), (0, 0)))
    x2d = x_pad.reshape(T * B_PAD, D)

    vmem = pl.BlockSpec(memory_space=pltpu.MemorySpace.VMEM)
    out_pad = pl.pallas_call(
        lstm_mlp_kernel,
        out_shape=jax.ShapeDtypeStruct((B_PAD, GATES), jnp.float32),
        in_specs=[vmem, vmem, vmem],
        out_specs=vmem,
    )(x2d, wslab, misc)
    return out_pad[:B, :O]


# ---------------------------- pure-JAX reference ---------------------------
def reference_forward(x, params):
    x_seq = jnp.transpose(x, (2, 0, 1)).astype(jnp.float32)    # (T, B, D)
    B = x_seq.shape[1]
    H = HIDDEN_DIM

    def lstm_layer(seq, p):
        def step(carry, x_t):
            h, c = carry
            gates = x_t @ p["weight_ih"].T + h @ p["weight_hh"].T \
                    + p["bias_ih"] + p["bias_hh"]
            i, f, g, o = jnp.split(gates, 4, axis=-1)
            i, f, o = jax.nn.sigmoid(i), jax.nn.sigmoid(f), jax.nn.sigmoid(o)
            g = jnp.tanh(g)
            c = f * c + i * g
            h = o * jnp.tanh(c)
            return (h, c), h
        init = (jnp.zeros((B, H), jnp.float32), jnp.zeros((B, H), jnp.float32))
        (h_n, _), ys = lax.scan(step, init, seq)
        return ys, h_n

    seq = x_seq
    h_n = None
    for p in params["lstm"]:
        seq, h_n = lstm_layer(seq, p)

    h = h_n
    for idx, p in enumerate(params["linear"]):
        h = h @ p["weight"].T + p["bias"]
        if idx < len(params["linear"]) - 1:
            h = jnp.maximum(h, 0.0)
    # Softmax(dim=1) on (1, B, O) == softmax over the batch axis of (B, O).
    return jax.nn.softmax(h, axis=0)


# --------------------------------- main ------------------------------------
if __name__ == "__main__":
    key = jax.random.PRNGKey(0)
    key_x, key_p = jax.random.split(key)
    x = jax.random.normal(key_x, (BATCH, INPUT_DIM, SEQ_LEN), jnp.float32)
    params = init_params(key_p)
    prep = prepare_params(params)

    out = jax.block_until_ready(
        lstm_network_forward(x, prep["wslab"], prep["misc"]))
    ref = jax.block_until_ready(reference_forward(x, params))

    assert out.shape == (BATCH, LINEAR_LAYERS[-1]), out.shape
    # bf16 MXU operands (f32 accumulation) -> relaxed tolerance vs f32 ref.
    assert jnp.allclose(out, ref, atol=2e-2, rtol=2e-2), (out, ref)
    print("KERNEL_OK")
</pallas_src>

<mosaic_0001>
module attributes {stable_mosaic.version = 11 : i64} {
  func.func @lstm_mlp_kernel(%arg0: memref<64x4xf32, #tpu.memory_space<vmem>>, %arg1: memref<272x128xbf16, #tpu.memory_space<vmem>>, %arg2: memref<32x128xf32, #tpu.memory_space<vmem>>, %arg3: memref<8x128xf32, #tpu.memory_space<vmem>>) attributes {dimension_semantics = [], scalar_prefetch = 0 : i64, scratch_operands = 0 : i64, tpu.core_type = #tpu.core_type<tc>} {
    %0 = tpu.iota {dimensions = array<i32: 1>} : vector<8x128xi32>
    %c64_i32 = arith.constant 64 : i32
    %1 = vector.broadcast %c64_i32 : i32 to vector<8x128xi32>
    %2 = arith.cmpi sge, %0, %1 : vector<8x128xi32>
    %c96_i32 = arith.constant 96 : i32
    %3 = vector.broadcast %c96_i32 : i32 to vector<8x128xi32>
    %4 = arith.cmpi slt, %0, %3 : vector<8x128xi32>
    %5 = arith.andi %2, %4 : vector<8x128xi1>
    %cst = arith.constant 1.000000e+00 : f32
    %cst_0 = arith.constant 5.000000e-01 : f32
    %6 = vector.broadcast %cst : f32 to vector<8x128xf32>
    %7 = vector.broadcast %cst_0 : f32 to vector<8x128xf32>
    %8 = arith.select %5, %6, %7 : vector<8x128xi1>, vector<8x128xf32>
    %cst_1 = arith.constant 0.000000e+00 : f32
    %cst_2 = arith.constant 5.000000e-01 : f32
    %9 = vector.broadcast %cst_1 : f32 to vector<8x128xf32>
    %10 = vector.broadcast %cst_2 : f32 to vector<8x128xf32>
    %11 = arith.select %5, %9, %10 : vector<8x128xi1>, vector<8x128xf32>
    %c0 = arith.constant 0 : index
    %c0_3 = arith.constant 0 : index
    %12 = vector.load %arg1[%c0, %c0_3] : memref<272x128xbf16, #tpu.memory_space<vmem>>, vector<4x128xbf16>
    %c16 = arith.constant 16 : index
    %c0_4 = arith.constant 0 : index
    %13 = vector.load %arg1[%c16, %c0_4] : memref<272x128xbf16, #tpu.memory_space<vmem>>, vector<32x128xbf16>
    %c48 = arith.constant 48 : index
    %c0_5 = arith.constant 0 : index
    %14 = vector.load %arg1[%c48, %c0_5] : memref<272x128xbf16, #tpu.memory_space<vmem>>, vector<64x128xbf16>
    %c112 = arith.constant 112 : index
    %c0_6 = arith.constant 0 : index
    %15 = vector.load %arg1[%c112, %c0_6] : memref<272x128xbf16, #tpu.memory_space<vmem>>, vector<32x128xbf16>
    %c144 = arith.constant 144 : index
    %c0_7 = arith.constant 0 : index
    %16 = vector.load %arg1[%c144, %c0_7] : memref<272x128xbf16, #tpu.memory_space<vmem>>, vector<128x128xbf16>
    %c0_8 = arith.constant 0 : index
    %c0_9 = arith.constant 0 : index
    %17 = vector.load %arg2[%c0_8, %c0_9] : memref<32x128xf32, #tpu.memory_space<vmem>>, vector<1x128xf32>
    %c8 = arith.constant 8 : index
    %c0_10 = arith.constant 0 : index
    %18 = vector.load %arg2[%c8, %c0_10] : memref<32x128xf32, #tpu.memory_space<vmem>>, vector<1x128xf32>
    %19 = vector.shape_cast %18 : vector<1x128xf32> to vector<1x128xf32>
    %20 = vector.broadcast %19 : vector<1x128xf32> to vector<8x128xf32>
    %c16_11 = arith.constant 16 : index
    %c0_12 = arith.constant 0 : index
    %21 = vector.load %arg2[%c16_11, %c0_12] : memref<32x128xf32, #tpu.memory_space<vmem>>, vector<1x128xf32>
    %c24 = arith.constant 24 : index
    %c0_13 = arith.constant 0 : index
    %22 = vector.load %arg2[%c24, %c0_13] : memref<32x128xf32, #tpu.memory_space<vmem>>, vector<1x128xf32>
    %c0_14 = arith.constant 0 : index
    %c0_15 = arith.constant 0 : index
    %23 = vector.load %arg0[%c0_14, %c0_15] : memref<64x4xf32, #tpu.memory_space<vmem>>, vector<64x4xf32>
    %24 = arith.truncf %23 : vector<64x4xf32> to vector<64x4xbf16>
    %cst_16 = arith.constant dense<0.000000e+00> : vector<64x128xf32>
    %25 = tpu.matmul %24, %12, %cst_16 {dimension_numbers = #tpu.dot_dimension_numbers<[1], [0], [0], [1], [0, 0, 1, 1], [], []>} : vector<64x4xbf16>, vector<4x128xbf16>, vector<64x128xf32> -> vector<64x128xf32>
    %26 = vector.broadcast %17 : vector<1x128xf32> to vector<64x128xf32>
    %27 = arith.addf %25, %26 : vector<64x128xf32>
    %cst_17 = arith.constant 0.000000e+00 : f32
    %28 = vector.broadcast %cst_17 : f32 to vector<8x32xf32>
    %29 = vector.extract_strided_slice %27 {offsets = [0, 0], sizes = [8, 128], strides = [1, 1]} : vector<64x128xf32> to vector<8x128xf32>
    %30 = arith.truncf %28 : vector<8x32xf32> to vector<8x32xbf16>
    %cst_18 = arith.constant dense<0.000000e+00> : vector<8x128xf32>
    %31 = tpu.matmul %30, %13, %cst_18 {dimension_numbers = #tpu.dot_dimension_numbers<[1], [0], [0], [1], [0, 0, 1, 1], [], []>} : vector<8x32xbf16>, vector<32x128xbf16>, vector<8x128xf32> -> vector<8x128xf32>
    %32 = arith.addf %29, %31 : vector<8x128xf32>
    %33 = arith.mulf %32, %8 : vector<8x128xf32>
    %34 = math.tanh %33 : vector<8x128xf32>
    %35 = arith.mulf %34, %8 : vector<8x128xf32>
    %36 = arith.addf %35, %11 : vector<8x128xf32>
    %37 = vector.extract_strided_slice %36 {offsets = [0, 0], sizes = [8, 32], strides = [1, 1]} : vector<8x128xf32> to vector<8x32xf32>
    %38 = vector.extract_strided_slice %36 {offsets = [0, 32], sizes = [8, 32], strides = [1, 1]} : vector<8x128xf32> to vector<8x32xf32>
    %39 = vector.extract_strided_slice %36 {offsets = [0, 64], sizes = [8, 32], strides = [1, 1]} : vector<8x128xf32> to vector<8x32xf32>
    %40 = vector.extract_strided_slice %36 {offsets = [0, 96], sizes = [8, 32], strides = [1, 1]} : vector<8x128xf32> to vector<8x32xf32>
    %41 = arith.mulf %38, %28 : vector<8x32xf32>
    %42 = arith.mulf %37, %39 : vector<8x32xf32>
    %43 = arith.addf %41, %42 : vector<8x32xf32>
    %44 = math.tanh %43 : vector<8x32xf32>
    %45 = arith.mulf %40, %44 : vector<8x32xf32>
    %46 = vector.extract_strided_slice %27 {offsets = [8, 0], sizes = [8, 128], strides = [1, 1]} : vector<64x128xf32> to vector<8x128xf32>
    %47 = arith.truncf %45 : vector<8x32xf32> to vector<8x32xbf16>
    %cst_19 = arith.constant dense<0.000000e+00> : vector<8x128xf32>
    %48 = tpu.matmul %47, %13, %cst_19 {dimension_numbers = #tpu.dot_dimension_numbers<[1], [0], [0], [1], [0, 0, 1, 1], [], []>} : vector<8x32xbf16>, vector<32x128xbf16>, vector<8x128xf32> -> vector<8x128xf32>
    %49 = arith.addf %46, %48 : vector<8x128xf32>
    %50 = arith.mulf %49, %8 : vector<8x128xf32>
    %51 = math.tanh %50 : vector<8x128xf32>
    %52 = arith.mulf %51, %8 : vector<8x128xf32>
    %53 = arith.addf %52, %11 : vector<8x128xf32>
    %54 = vector.extract_strided_slice %53 {offsets = [0, 0], sizes = [8, 32], strides = [1, 1]} : vector<8x128xf32> to vector<8x32xf32>
    %55 = vector.extract_strided_slice %53 {offsets = [0, 32], sizes = [8, 32], strides = [1, 1]} : vector<8x128xf32> to vector<8x32xf32>
    %56 = vector.extract_strided_slice %53 {offsets = [0, 64], sizes = [8, 32], strides = [1, 1]} : vector<8x128xf32> to vector<8x32xf32>
    %57 = vector.extract_strided_slice %53 {offsets = [0, 96], sizes = [8, 32], strides = [1, 1]} : vector<8x128xf32> to vector<8x32xf32>
    %58 = arith.mulf %55, %43 : vector<8x32xf32>
    %59 = arith.mulf %54, %56 : vector<8x32xf32>
    %60 = arith.addf %58, %59 : vector<8x32xf32>
    %61 = math.tanh %60 : vector<8x32xf32>
    %62 = arith.mulf %57, %61 : vector<8x32xf32>
    %63 = tpu.concatenate %45, %28 in 1 : vector<8x32xf32>, vector<8x32xf32> -> vector<8x64xf32>
    %64 = arith.truncf %63 : vector<8x64xf32> to vector<8x64xbf16>
    %cst_20 = arith.constant dense<0.000000e+00> : vector<8x128xf32>
    %65 = tpu.matmul %64, %14, %cst_20 {dimension_numbers = #tpu.dot_dimension_numbers<[1], [0], [0], [1], [0, 0, 1, 1], [], []>} : vector<8x64xbf16>, vector<64x128xbf16>, vector<8x128xf32> -> vector<8x128xf32>
    %66 = arith.addf %65, %20 : vector<8x128xf32>
    %67 = arith.mulf %66, %8 : vector<8x128xf32>
    %68 = math.tanh %67 : vector<8x128xf32>
    %69 = arith.mulf %68, %8 : vector<8x128xf32>
    %70 = arith.addf %69, %11 : vector<8x128xf32>
    %71 = vector.extract_strided_slice %70 {offsets = [0, 0], sizes = [8, 32], strides = [1, 1]} : vector<8x128xf32> to vector<8x32xf32>
    %72 = vector.extract_strided_slice %70 {offsets = [0, 32], sizes = [8, 32], strides = [1, 1]} : vector<8x128xf32> to vector<8x32xf32>
    %73 = vector.extract_strided_slice %70 {offsets = [0, 64], sizes = [8, 32], strides = [1, 1]} : vector<8x128xf32> to vector<8x32xf32>
    %74 = vector.extract_strided_slice %70 {offsets = [0, 96], sizes = [8, 32], strides = [1, 1]} : vector<8x128xf32> to vector<8x32xf32>
    %75 = arith.mulf %72, %28 : vector<8x32xf32>
    %76 = arith.mulf %71, %73 : vector<8x32xf32>
    %77 = arith.addf %75, %76 : vector<8x32xf32>
    %78 = math.tanh %77 : vector<8x32xf32>
    %79 = arith.mulf %74, %78 : vector<8x32xf32>
    %80 = vector.extract_strided_slice %27 {offsets = [16, 0], sizes = [8, 128], strides = [1, 1]} : vector<64x128xf32> to vector<8x128xf32>
    %81 = arith.truncf %62 : vector<8x32xf32> to vector<8x32xbf16>
    %cst_21 = arith.constant dense<0.000000e+00> : vector<8x128xf32>
    %82 = tpu.matmul %81, %13, %cst_21 {dimension_numbers = #tpu.dot_dimension_numbers<[1], [0], [0], [1], [0, 0, 1, 1], [], []>} : vector<8x32xbf16>, vector<32x128xbf16>, vector<8x128xf32> -> vector<8x128xf32>
    %83 = arith.addf %80, %82 : vector<8x128xf32>
    %84 = arith.mulf %83, %8 : vector<8x128xf32>
    %85 = math.tanh %84 : vector<8x128xf32>
    %86 = arith.mulf %85, %8 : vector<8x128xf32>
    %87 = arith.addf %86, %11 : vector<8x128xf32>
    %88 = vector.extract_strided_slice %87 {offsets = [0, 0], sizes = [8, 32], strides = [1, 1]} : vector<8x128xf32> to vector<8x32xf32>
    %89 = vector.extract_strided_slice %87 {offsets = [0, 32], sizes = [8, 32], strides = [1, 1]} : vector<8x128xf32> to vector<8x32xf32>
    %90 = vector.extract_strided_slice %87 {offsets = [0, 64], sizes = [8, 32], strides = [1, 1]} : vector<8x128xf32> to vector<8x32xf32>
    %91 = vector.extract_strided_slice %87 {offsets = [0, 96], sizes = [8, 32], strides = [1, 1]} : vector<8x128xf32> to vector<8x32xf32>
    %92 = arith.mulf %89, %60 : vector<8x32xf32>
    %93 = arith.mulf %88, %90 : vector<8x32xf32>
    %94 = arith.addf %92, %93 : vector<8x32xf32>
    %95 = math.tanh %94 : vector<8x32xf32>
    %96 = arith.mulf %91, %95 : vector<8x32xf32>
    %97 = tpu.concatenate %62, %79 in 1 : vector<8x32xf32>, vector<8x32xf32> -> vector<8x64xf32>
    %98 = arith.truncf %97 : vector<8x64xf32> to vector<8x64xbf16>
    %cst_22 = arith.constant dense<0.000000e+00> : vector<8x128xf32>
    %99 = tpu.matmul %98, %14, %cst_22 {dimension_numbers = #tpu.dot_dimension_numbers<[1], [0], [0], [1], [0, 0, 1, 1], [], []>} : vector<8x64xbf16>, vector<64x128xbf16>, vector<8x128xf32> -> vector<8x128xf32>
    %100 = arith.addf %99, %20 : vector<8x128xf32>
    %101 = arith.mulf %100, %8 : vector<8x128xf32>
    %102 = math.tanh %101 : vector<8x128xf32>
    %103 = arith.mulf %102, %8 : vector<8x128xf32>
    %104 = arith.addf %103, %11 : vector<8x128xf32>
    %105 = vector.extract_strided_slice %104 {offsets = [0, 0], sizes = [8, 32], strides = [1, 1]} : vector<8x128xf32> to vector<8x32xf32>
    %106 = vector.extract_strided_slice %104 {offsets = [0, 32], sizes = [8, 32], strides = [1, 1]} : vector<8x128xf32> to vector<8x32xf32>
    %107 = vector.extract_strided_slice %104 {offsets = [0, 64], sizes = [8, 32], strides = [1, 1]} : vector<8x128xf32> to vector<8x32xf32>
    %108 = vector.extract_strided_slice %104 {offsets = [0, 96], sizes = [8, 32], strides = [1, 1]} : vector<8x128xf32> to vector<8x32xf32>
    %109 = arith.mulf %106, %77 : vector<8x32xf32>
    %110 = arith.mulf %105, %107 : vector<8x32xf32>
    %111 = arith.addf %109, %110 : vector<8x32xf32>
    %112 = math.tanh %111 : vector<8x32xf32>
    %113 = arith.mulf %108, %112 : vector<8x32xf32>
    %114 = vector.extract_strided_slice %27 {offsets = [24, 0], sizes = [8, 128], strides = [1, 1]} : vector<64x128xf32> to vector<8x128xf32>
    %115 = arith.truncf %96 : vector<8x32xf32> to vector<8x32xbf16>
    %cst_23 = arith.constant dense<0.000000e+00> : vector<8x128xf32>
    %116 = tpu.matmul %115, %13, %cst_23 {dimension_numbers = #tpu.dot_dimension_numbers<[1], [0], [0], [1], [0, 0, 1, 1], [], []>} : vector<8x32xbf16>, vector<32x128xbf16>, vector<8x128xf32> -> vector<8x128xf32>
    %117 = arith.addf %114, %116 : vector<8x128xf32>
    %118 = arith.mulf %117, %8 : vector<8x128xf32>
    %119 = math.tanh %118 : vector<8x128xf32>
    %120 = arith.mulf %119, %8 : vector<8x128xf32>
    %121 = arith.addf %120, %11 : vector<8x128xf32>
    %122 = vector.extract_strided_slice %121 {offsets = [0, 0], sizes = [8, 32], strides = [1, 1]} : vector<8x128xf32> to vector<8x32xf32>
    %123 = vector.extract_strided_slice %121 {offsets = [0, 32], sizes = [8, 32], strides = [1, 1]} : vector<8x128xf32> to vector<8x32xf32>
    %124 = vector.extract_strided_slice %121 {offsets = [0, 64], sizes = [8, 32], strides = [1, 1]} : vector<8x128xf32> to vector<8x32xf32>
    %125 = vector.extract_strided_slice %121 {offsets = [0, 96], sizes = [8, 32], strides = [1, 1]} : vector<8x128xf32> to vector<8x32xf32>
    %126 = arith.mulf %123, %94 : vector<8x32xf32>
    %127 = arith.mulf %122, %124 : vector<8x32xf32>
    %128 = arith.addf %126, %127 : vector<8x32xf32>
    %129 = math.tanh %128 : vector<8x32xf32>
    %130 = arith.mulf %125, %129 : vector<8x32xf32>
    %131 = tpu.concatenate %96, %113 in 1 : vector<8x32xf32>, vector<8x32xf32> -> vector<8x64xf32>
    %132 = arith.truncf %131 : vector<8x64xf32> to vector<8x64xbf16>
    %cst_24 = arith.constant dense<0.000000e+00> : vector<8x128xf32>
    %133 = tpu.matmul %132, %14, %cst_24 {dimension_numbers = #tpu.dot_dimension_numbers<[1], [0], [0], [1], [0, 0, 1, 1], [], []>} : vector<8x64xbf16>, vector<64x128xbf16>, vector<8x128xf32> -> vector<8x128xf32>
    %134 = arith.addf %133, %20 : vector<8x128xf32>
    %135 = arith.mulf %134, %8 : vector<8x128xf32>
    %136 = math.tanh %135 : vector<8x128xf32>
    %137 = arith.mulf %136, %8 : vector<8x128xf32>
    %138 = arith.addf %137, %11 : vector<8x128xf32>
    %139 = vector.extract_strided_slice %138 {offsets = [0, 0], sizes = [8, 32], strides = [1, 1]} : vector<8x128xf32> to vector<8x32xf32>
    %140 = vector.extract_strided_slice %138 {offsets = [0, 32], sizes = [8, 32], strides = [1, 1]} : vector<8x128xf32> to vector<8x32xf32>
    %141 = vector.extract_strided_slice %138 {offsets = [0, 64], sizes = [8, 32], strides = [1, 1]} : vector<8x128xf32> to vector<8x32xf32>
    %142 = vector.extract_strided_slice %138 {offsets = [0, 96], sizes = [8, 32], strides = [1, 1]} : vector<8x128xf32> to vector<8x32xf32>
    %143 = arith.mulf %140, %111 : vector<8x32xf32>
    %144 = arith.mulf %139, %141 : vector<8x32xf32>
    %145 = arith.addf %143, %144 : vector<8x32xf32>
    %146 = math.tanh %145 : vector<8x32xf32>
    %147 = arith.mulf %142, %146 : vector<8x32xf32>
    %148 = vector.extract_strided_slice %27 {offsets = [32, 0], sizes = [8, 128], strides = [1, 1]} : vector<64x128xf32> to vector<8x128xf32>
    %149 = arith.truncf %130 : vector<8x32xf32> to vector<8x32xbf16>
    %cst_25 = arith.constant dense<0.000000e+00> : vector<8x128xf32>
    %150 = tpu.matmul %149, %13, %cst_25 {dimension_numbers = #tpu.dot_dimension_numbers<[1], [0], [0], [1], [0, 0, 1, 1], [], []>} : vector<8x32xbf16>, vector<32x128xbf16>, vector<8x128xf32> -> vector<8x128xf32>
    %151 = arith.addf %148, %150 : vector<8x128xf32>
    %152 = arith.mulf %151, %8 : vector<8x128xf32>
    %153 = math.tanh %152 : vector<8x128xf32>
    %154 = arith.mulf %153, %8 : vector<8x128xf32>
    %155 = arith.addf %154, %11 : vector<8x128xf32>
    %156 = vector.extract_strided_slice %155 {offsets = [0, 0], sizes = [8, 32], strides = [1, 1]} : vector<8x128xf32> to vector<8x32xf32>
    %157 = vector.extract_strided_slice %155 {offsets = [0, 32], sizes = [8, 32], strides = [1, 1]} : vector<8x128xf32> to vector<8x32xf32>
    %158 = vector.extract_strided_slice %155 {offsets = [0, 64], sizes = [8, 32], strides = [1, 1]} : vector<8x128xf32> to vector<8x32xf32>
    %159 = vector.extract_strided_slice %155 {offsets = [0, 96], sizes = [8, 32], strides = [1, 1]} : vector<8x128xf32> to vector<8x32xf32>
    %160 = arith.mulf %157, %128 : vector<8x32xf32>
    %161 = arith.mulf %156, %158 : vector<8x32xf32>
    %162 = arith.addf %160, %161 : vector<8x32xf32>
    %163 = math.tanh %162 : vector<8x32xf32>
    %164 = arith.mulf %159, %163 : vector<8x32xf32>
    %165 = tpu.concatenate %130, %147 in 1 : vector<8x32xf32>, vector<8x32xf32> -> vector<8x64xf32>
    %166 = arith.truncf %165 : vector<8x64xf32> to vector<8x64xbf16>
    %cst_26 = arith.constant dense<0.000000e+00> : vector<8x128xf32>
    %167 = tpu.matmul %166, %14, %cst_26 {dimension_numbers = #tpu.dot_dimension_numbers<[1], [0], [0], [1], [0, 0, 1, 1], [], []>} : vector<8x64xbf16>, vector<64x128xbf16>, vector<8x128xf32> -> vector<8x128xf32>
    %168 = arith.addf %167, %20 : vector<8x128xf32>
    %169 = arith.mulf %168, %8 : vector<8x128xf32>
    %170 = math.tanh %169 : vector<8x128xf32>
    %171 = arith.mulf %170, %8 : vector<8x128xf32>
    %172 = arith.addf %171, %11 : vector<8x128xf32>
    %173 = vector.extract_strided_slice %172 {offsets = [0, 0], sizes = [8, 32], strides = [1, 1]} : vector<8x128xf32> to vector<8x32xf32>
    %174 = vector.extract_strided_slice %172 {offsets = [0, 32], sizes = [8, 32], strides = [1, 1]} : vector<8x128xf32> to vector<8x32xf32>
    %175 = vector.extract_strided_slice %172 {offsets = [0, 64], sizes = [8, 32], strides = [1, 1]} : vector<8x128xf32> to vector<8x32xf32>
    %176 = vector.extract_strided_slice %172 {offsets = [0, 96], sizes = [8, 32], strides = [1, 1]} : vector<8x128xf32> to vector<8x32xf32>
    %177 = arith.mulf %174, %145 : vector<8x32xf32>
    %178 = arith.mulf %173, %175 : vector<8x32xf32>
    %179 = arith.addf %177, %178 : vector<8x32xf32>
    %180 = math.tanh %179 : vector<8x32xf32>
    %181 = arith.mulf %176, %180 : vector<8x32xf32>
    %182 = vector.extract_strided_slice %27 {offsets = [40, 0], sizes = [8, 128], strides = [1, 1]} : vector<64x128xf32> to vector<8x128xf32>
    %183 = arith.truncf %164 : vector<8x32xf32> to vector<8x32xbf16>
    %cst_27 = arith.constant dense<0.000000e+00> : vector<8x128xf32>
    %184 = tpu.matmul %183, %13, %cst_27 {dimension_numbers = #tpu.dot_dimension_numbers<[1], [0], [0], [1], [0, 0, 1, 1], [], []>} : vector<8x32xbf16>, vector<32x128xbf16>, vector<8x128xf32> -> vector<8x128xf32>
    %185 = arith.addf %182, %184 : vector<8x128xf32>
    %186 = arith.mulf %185, %8 : vector<8x128xf32>
    %187 = math.tanh %186 : vector<8x128xf32>
    %188 = arith.mulf %187, %8 : vector<8x128xf32>
    %189 = arith.addf %188, %11 : vector<8x128xf32>
    %190 = vector.extract_strided_slice %189 {offsets = [0, 0], sizes = [8, 32], strides = [1, 1]} : vector<8x128xf32> to vector<8x32xf32>
    %191 = vector.extract_strided_slice %189 {offsets = [0, 32], sizes = [8, 32], strides = [1, 1]} : vector<8x128xf32> to vector<8x32xf32>
    %192 = vector.extract_strided_slice %189 {offsets = [0, 64], sizes = [8, 32], strides = [1, 1]} : vector<8x128xf32> to vector<8x32xf32>
    %193 = vector.extract_strided_slice %189 {offsets = [0, 96], sizes = [8, 32], strides = [1, 1]} : vector<8x128xf32> to vector<8x32xf32>
    %194 = arith.mulf %191, %162 : vector<8x32xf32>
    %195 = arith.mulf %190, %192 : vector<8x32xf32>
    %196 = arith.addf %194, %195 : vector<8x32xf32>
    %197 = math.tanh %196 : vector<8x32xf32>
    %198 = arith.mulf %193, %197 : vector<8x32xf32>
    %199 = tpu.concatenate %164, %181 in 1 : vector<8x32xf32>, vector<8x32xf32> -> vector<8x64xf32>
    %200 = arith.truncf %199 : vector<8x64xf32> to vector<8x64xbf16>
    %cst_28 = arith.constant dense<0.000000e+00> : vector<8x128xf32>
    %201 = tpu.matmul %200, %14, %cst_28 {dimension_numbers = #tpu.dot_dimension_numbers<[1], [0], [0], [1], [0, 0, 1, 1], [], []>} : vector<8x64xbf16>, vector<64x128xbf16>, vector<8x128xf32> -> vector<8x128xf32>
    %202 = arith.addf %201, %20 : vector<8x128xf32>
    %203 = arith.mulf %202, %8 : vector<8x128xf32>
    %204 = math.tanh %203 : vector<8x128xf32>
    %205 = arith.mulf %204, %8 : vector<8x128xf32>
    %206 = arith.addf %205, %11 : vector<8x128xf32>
    %207 = vector.extract_strided_slice %206 {offsets = [0, 0], sizes = [8, 32], strides = [1, 1]} : vector<8x128xf32> to vector<8x32xf32>
    %208 = vector.extract_strided_slice %206 {offsets = [0, 32], sizes = [8, 32], strides = [1, 1]} : vector<8x128xf32> to vector<8x32xf32>
    %209 = vector.extract_strided_slice %206 {offsets = [0, 64], sizes = [8, 32], strides = [1, 1]} : vector<8x128xf32> to vector<8x32xf32>
    %210 = vector.extract_strided_slice %206 {offsets = [0, 96], sizes = [8, 32], strides = [1, 1]} : vector<8x128xf32> to vector<8x32xf32>
    %211 = arith.mulf %208, %179 : vector<8x32xf32>
    %212 = arith.mulf %207, %209 : vector<8x32xf32>
    %213 = arith.addf %211, %212 : vector<8x32xf32>
    %214 = math.tanh %213 : vector<8x32xf32>
    %215 = arith.mulf %210, %214 : vector<8x32xf32>
    %216 = vector.extract_strided_slice %27 {offsets = [48, 0], sizes = [8, 128], strides = [1, 1]} : vector<64x128xf32> to vector<8x128xf32>
    %217 = arith.truncf %198 : vector<8x32xf32> to vector<8x32xbf16>
    %cst_29 = arith.constant dense<0.000000e+00> : vector<8x128xf32>
    %218 = tpu.matmul %217, %13, %cst_29 {dimension_numbers = #tpu.dot_dimension_numbers<[1], [0], [0], [1], [0, 0, 1, 1], [], []>} : vector<8x32xbf16>, vector<32x128xbf16>, vector<8x128xf32> -> vector<8x128xf32>
    %219 = arith.addf %216, %218 : vector<8x128xf32>
    %220 = arith.mulf %219, %8 : vector<8x128xf32>
    %221 = math.tanh %220 : vector<8x128xf32>
    %222 = arith.mulf %221, %8 : vector<8x128xf32>
    %223 = arith.addf %222, %11 : vector<8x128xf32>
    %224 = vector.extract_strided_slice %223 {offsets = [0, 0], sizes = [8, 32], strides = [1, 1]} : vector<8x128xf32> to vector<8x32xf32>
    %225 = vector.extract_strided_slice %223 {offsets = [0, 32], sizes = [8, 32], strides = [1, 1]} : vector<8x128xf32> to vector<8x32xf32>
    %226 = vector.extract_strided_slice %223 {offsets = [0, 64], sizes = [8, 32], strides = [1, 1]} : vector<8x128xf32> to vector<8x32xf32>
    %227 = vector.extract_strided_slice %223 {offsets = [0, 96], sizes = [8, 32], strides = [1, 1]} : vector<8x128xf32> to vector<8x32xf32>
    %228 = arith.mulf %225, %196 : vector<8x32xf32>
    %229 = arith.mulf %224, %226 : vector<8x32xf32>
    %230 = arith.addf %228, %229 : vector<8x32xf32>
    %231 = math.tanh %230 : vector<8x32xf32>
    %232 = arith.mulf %227, %231 : vector<8x32xf32>
    %233 = tpu.concatenate %198, %215 in 1 : vector<8x32xf32>, vector<8x32xf32> -> vector<8x64xf32>
    %234 = arith.truncf %233 : vector<8x64xf32> to vector<8x64xbf16>
    %cst_30 = arith.constant dense<0.000000e+00> : vector<8x128xf32>
    %235 = tpu.matmul %234, %14, %cst_30 {dimension_numbers = #tpu.dot_dimension_numbers<[1], [0], [0], [1], [0, 0, 1, 1], [], []>} : vector<8x64xbf16>, vector<64x128xbf16>, vector<8x128xf32> -> vector<8x128xf32>
    %236 = arith.addf %235, %20 : vector<8x128xf32>
    %237 = arith.mulf %236, %8 : vector<8x128xf32>
    %238 = math.tanh %237 : vector<8x128xf32>
    %239 = arith.mulf %238, %8 : vector<8x128xf32>
    %240 = arith.addf %239, %11 : vector<8x128xf32>
    %241 = vector.extract_strided_slice %240 {offsets = [0, 0], sizes = [8, 32], strides = [1, 1]} : vector<8x128xf32> to vector<8x32xf32>
    %242 = vector.extract_strided_slice %240 {offsets = [0, 32], sizes = [8, 32], strides = [1, 1]} : vector<8x128xf32> to vector<8x32xf32>
    %243 = vector.extract_strided_slice %240 {offsets = [0, 64], sizes = [8, 32], strides = [1, 1]} : vector<8x128xf32> to vector<8x32xf32>
    %244 = vector.extract_strided_slice %240 {offsets = [0, 96], sizes = [8, 32], strides = [1, 1]} : vector<8x128xf32> to vector<8x32xf32>
    %245 = arith.mulf %242, %213 : vector<8x32xf32>
    %246 = arith.mulf %241, %243 : vector<8x32xf32>
    %247 = arith.addf %245, %246 : vector<8x32xf32>
    %248 = math.tanh %247 : vector<8x32xf32>
    %249 = arith.mulf %244, %248 : vector<8x32xf32>
    %250 = vector.extract_strided_slice %27 {offsets = [56, 0], sizes = [8, 128], strides = [1, 1]} : vector<64x128xf32> to vector<8x128xf32>
    %251 = arith.truncf %232 : vector<8x32xf32> to vector<8x32xbf16>
    %cst_31 = arith.constant dense<0.000000e+00> : vector<8x128xf32>
    %252 = tpu.matmul %251, %13, %cst_31 {dimension_numbers = #tpu.dot_dimension_numbers<[1], [0], [0], [1], [0, 0, 1, 1], [], []>} : vector<8x32xbf16>, vector<32x128xbf16>, vector<8x128xf32> -> vector<8x128xf32>
    %253 = arith.addf %250, %252 : vector<8x128xf32>
    %254 = arith.mulf %253, %8 : vector<8x128xf32>
    %255 = math.tanh %254 : vector<8x128xf32>
    %256 = arith.mulf %255, %8 : vector<8x128xf32>
    %257 = arith.addf %256, %11 : vector<8x128xf32>
    %258 = vector.extract_strided_slice %257 {offsets = [0, 0], sizes = [8, 32], strides = [1, 1]} : vector<8x128xf32> to vector<8x32xf32>
    %259 = vector.extract_strided_slice %257 {offsets = [0, 32], sizes = [8, 32], strides = [1, 1]} : vector<8x128xf32> to vector<8x32xf32>
    %260 = vector.extract_strided_slice %257 {offsets = [0, 64], sizes = [8, 32], strides = [1, 1]} : vector<8x128xf32> to vector<8x32xf32>
    %261 = vector.extract_strided_slice %257 {offsets = [0, 96], sizes = [8, 32], strides = [1, 1]} : vector<8x128xf32> to vector<8x32xf32>
    %262 = arith.mulf %259, %230 : vector<8x32xf32>
    %263 = arith.mulf %258, %260 : vector<8x32xf32>
    %264 = arith.addf %262, %263 : vector<8x32xf32>
    %265 = math.tanh %264 : vector<8x32xf32>
    %266 = arith.mulf %261, %265 : vector<8x32xf32>
    %267 = tpu.concatenate %232, %249 in 1 : vector<8x32xf32>, vector<8x32xf32> -> vector<8x64xf32>
    %268 = arith.truncf %267 : vector<8x64xf32> to vector<8x64xbf16>
    %cst_32 = arith.constant dense<0.000000e+00> : vector<8x128xf32>
    %269 = tpu.matmul %268, %14, %cst_32 {dimension_numbers = #tpu.dot_dimension_numbers<[1], [0], [0], [1], [0, 0, 1, 1], [], []>} : vector<8x64xbf16>, vector<64x128xbf16>, vector<8x128xf32> -> vector<8x128xf32>
    %270 = arith.addf %269, %20 : vector<8x128xf32>
    %271 = arith.mulf %270, %8 : vector<8x128xf32>
    %272 = math.tanh %271 : vector<8x128xf32>
    %273 = arith.mulf %272, %8 : vector<8x128xf32>
    %274 = arith.addf %273, %11 : vector<8x128xf32>
    %275 = vector.extract_strided_slice %274 {offsets = [0, 0], sizes = [8, 32], strides = [1, 1]} : vector<8x128xf32> to vector<8x32xf32>
    %276 = vector.extract_strided_slice %274 {offsets = [0, 32], sizes = [8, 32], strides = [1, 1]} : vector<8x128xf32> to vector<8x32xf32>
    %277 = vector.extract_strided_slice %274 {offsets = [0, 64], sizes = [8, 32], strides = [1, 1]} : vector<8x128xf32> to vector<8x32xf32>
    %278 = vector.extract_strided_slice %274 {offsets = [0, 96], sizes = [8, 32], strides = [1, 1]} : vector<8x128xf32> to vector<8x32xf32>
    %279 = arith.mulf %276, %247 : vector<8x32xf32>
    %280 = arith.mulf %275, %277 : vector<8x32xf32>
    %281 = arith.addf %279, %280 : vector<8x32xf32>
    %282 = math.tanh %281 : vector<8x32xf32>
    %283 = arith.mulf %278, %282 : vector<8x32xf32>
    %284 = tpu.concatenate %266, %283 in 1 : vector<8x32xf32>, vector<8x32xf32> -> vector<8x64xf32>
    %285 = arith.truncf %284 : vector<8x64xf32> to vector<8x64xbf16>
    %cst_33 = arith.constant dense<0.000000e+00> : vector<8x128xf32>
    %286 = tpu.matmul %285, %14, %cst_33 {dimension_numbers = #tpu.dot_dimension_numbers<[1], [0], [0], [1], [0, 0, 1, 1], [], []>} : vector<8x64xbf16>, vector<64x128xbf16>, vector<8x128xf32> -> vector<8x128xf32>
    %287 = arith.addf %286, %20 : vector<8x128xf32>
    %288 = arith.mulf %287, %8 : vector<8x128xf32>
    %289 = math.tanh %288 : vector<8x128xf32>
    %290 = arith.mulf %289, %8 : vector<8x128xf32>
    %291 = arith.addf %290, %11 : vector<8x128xf32>
    %292 = vector.extract_strided_slice %291 {offsets = [0, 0], sizes = [8, 32], strides = [1, 1]} : vector<8x128xf32> to vector<8x32xf32>
    %293 = vector.extract_strided_slice %291 {offsets = [0, 32], sizes = [8, 32], strides = [1, 1]} : vector<8x128xf32> to vector<8x32xf32>
    %294 = vector.extract_strided_slice %291 {offsets = [0, 64], sizes = [8, 32], strides = [1, 1]} : vector<8x128xf32> to vector<8x32xf32>
    %295 = vector.extract_strided_slice %291 {offsets = [0, 96], sizes = [8, 32], strides = [1, 1]} : vector<8x128xf32> to vector<8x32xf32>
    %296 = arith.mulf %293, %281 : vector<8x32xf32>
    %297 = arith.mulf %292, %294 : vector<8x32xf32>
    %298 = arith.addf %296, %297 : vector<8x32xf32>
    %299 = math.tanh %298 : vector<8x32xf32>
    %300 = arith.mulf %295, %299 : vector<8x32xf32>
    %301 = arith.truncf %300 : vector<8x32xf32> to vector<8x32xbf16>
    %cst_34 = arith.constant dense<0.000000e+00> : vector<8x128xf32>
    %302 = tpu.matmul %301, %15, %cst_34 {dimension_numbers = #tpu.dot_dimension_numbers<[1], [0], [0], [1], [0, 0, 1, 1], [], []>} : vector<8x32xbf16>, vector<32x128xbf16>, vector<8x128xf32> -> vector<8x128xf32>
    %303 = vector.broadcast %21 : vector<1x128xf32> to vector<8x128xf32>
    %304 = arith.addf %302, %303 : vector<8x128xf32>
    %cst_35 = arith.constant 0.000000e+00 : f32
    %305 = vector.broadcast %cst_35 : f32 to vector<8x128xf32>
    %306 = arith.maximumf %304, %305 : vector<8x128xf32>
    %307 = arith.truncf %306 : vector<8x128xf32> to vector<8x128xbf16>
    %cst_36 = arith.constant dense<0.000000e+00> : vector<8x128xf32>
    %308 = tpu.matmul %307, %16, %cst_36 {dimension_numbers = #tpu.dot_dimension_numbers<[1], [0], [0], [1], [0, 0, 1, 1], [], []>} : vector<8x128xbf16>, vector<128x128xbf16>, vector<8x128xf32> -> vector<8x128xf32>
    %309 = vector.broadcast %22 : vector<1x128xf32> to vector<8x128xf32>
    %310 = arith.addf %308, %309 : vector<8x128xf32>
    %311 = tpu.iota {dimensions = array<i32: 0>} : vector<8x128xi32>
    %c2_i32 = arith.constant 2 : i32
    %312 = vector.broadcast %c2_i32 : i32 to vector<8x128xi32>
    %313 = arith.cmpi slt, %311, %312 : vector<8x128xi32>
    %cst_37 = arith.constant -1.000000e+30 : f32
    %314 = vector.broadcast %cst_37 : f32 to vector<8x128xf32>
    %315 = arith.select %313, %310, %314 : vector<8x128xi1>, vector<8x128xf32>
    %cst_38 = arith.constant dense<0xFF800000> : vector<128xf32>
    %316 = vector.multi_reduction <maximumf>, %315, %cst_38 [0] : vector<8x128xf32> to vector<128xf32>
    %317 = vector.shape_cast %316 : vector<128xf32> to vector<1x128xf32>
    %318 = vector.broadcast %317 : vector<1x128xf32> to vector<8x128xf32>
    %319 = arith.subf %315, %318 : vector<8x128xf32>
    %320 = math.exp %319 : vector<8x128xf32>
    %cst_39 = arith.constant 0.000000e+00 : f32
    %321 = vector.broadcast %cst_39 : f32 to vector<8x128xf32>
    %322 = arith.select %313, %320, %321 : vector<8x128xi1>, vector<8x128xf32>
    %cst_40 = arith.constant dense<0.000000e+00> : vector<128xf32>
    %323 = vector.multi_reduction <add>, %322, %cst_40 [0] : vector<8x128xf32> to vector<128xf32>
    %324 = vector.shape_cast %323 : vector<128xf32> to vector<1x128xf32>
    %325 = vector.broadcast %324 : vector<1x128xf32> to vector<8x128xf32>
    %326 = arith.divf %322, %325 : vector<8x128xf32>
    %c0_41 = arith.constant 0 : index
    %c0_42 = arith.constant 0 : index
    %327 = vector.load %arg3[%c0_41, %c0_42] : memref<8x128xf32, #tpu.memory_space<vmem>>, vector<8x128xf32>
    tpu.vector_store %arg3[%c0_41, %c0_42], %326 {strides = array<i32>} : memref<8x128xf32, #tpu.memory_space<vmem>>, vector<8x128xf32>,
    return
  }
}

</mosaic_0001>

<bundles_post_ra>
// kernel: lstm_network_forward.1
= control target key start
LH: loop header
LB: loop body
LE: loop exit
PB: predicated region body
PF: predicated region fallthrough
CT: control target
= control target key end

     0   :  { %8 = vsyncpa [#allocation3], 0  ;;  %s1970_s12 = smov [#allocation2]   ;;  %s2453_s0 = inlined_call_operand.vmem [shape: f32[64,4], index: 0, kind: input, shape index: {}]   ;;  %s2454_s1 = inlined_call_operand.hbm [shape: bf16[272,128], index: 1, kind: input, shape index: {}]   ;;  %s2455_s2 = inlined_call_operand.vmem [shape: f32[32,128], index: 2, kind: input, shape index: {}]   ;;  %s2456_s3 = inlined_call_operand.vmem [shape: f32[8,128], index: 3, kind: output, shape index: {}]  }
   0x1   :  { %s16_s13 = sshll.u32 %s1970_s12, 4  ;;  %s1946_s16 = scalar_lea.hbm %s2454_s1, 2176  ;;  %s17_s13 = int_to_ptr.vmem [resolvable:$true] %s16_s13 }
   0x2   :  { %p1947_p0 = scmp.ne.s32.totalorder %s2454_s1, %s1946_s16  ;;  %p1950_p1 = scmp.lt.u32.totalorder %s1946_s16, %s2454_s1 }
   0x4   :  { %p1952_p2 = pnand %p1950_p1, %p1947_p0 }
   0x6   :  { %1955 = shalt.err (!%p1952_p2)
}
   0x7   :  { %s1956_s21 = scalar_lea.vmem %s17_s13, 2176  ;;  %p1961_p4 = scmp.lt.s32.totalorder %s17_s13, %s17_s13 }
   0x8   :  { %p1957_p3 = scmp.ne.s32.totalorder %s17_s13, %s1956_s21  ;;  %p1962_p5 = scmp.lt.s32.totalorder %s1956_s21, %s1956_s21 }
   0xa   :  { %p1963_p6 = por %p1962_p5, %p1961_p4 }
   0xc   :  { %p1964_p7 = pnand %p1963_p6, %p1957_p3 }
   0xe   :  { %1967 = shalt.err (!%p1964_p7)
}
   0xf   :  { %s1971_s22 = smov 64   ;;  %s1972_s23 = smov 4  }
  0x10   :  { %22 = dma.hbm_to_vmem [thread:$0]  %s2454_s1, 2176, %s17_s13, [#allocation3], %s1971_s22, %s1971_s22, %s1972_s23  }
  0x11   :  { %1968 = dma.done.wait [#allocation3], 2176  }
  0x12   :  { %1969 = vsyncadd [#allocation3], 4294965120  ;;  %v1973_v0 = vmov 0.0   ;;  %vm1974_vm0 = vmmov 0   ;;  %vm106_vm1 = vcmask 1041408   ;;  %v2015_v3 = vld [vmem:[#allocation2 + $0x8] sm:$0xff]   ;;  %v29_v12 = vlaneseq }
  0x13   :  { %1665 = vmatprep.subr.bf16.mxu1 %v1973_v0  ;;  %1669 = vmatprep.mubr.msk.bf16.mxu1 %vm1974_vm0, %v1973_v0  ;;  %v36_v1 = vld [vmem:[#allocation2] sm:$0x3]  ;;  %v78_v5 = vld [vmem:[%s2453_s0 + $0x8] sm:$0xff]  ;;  %vm93_vm2 = vcmask 31744   ;;  %v79_v7 = vld [vmem:[%s2453_s0 + $0x10] sm:$0xff]  ;;  %v1975_v11 = vmov 0  }
  0x14   :  { %1853 = vmatprep.subr.msk.bf16.mxu0 %vm106_vm1, %v36_v1  ;;  %v108_v2 = vsel %vm106_vm1, %v36_v1, 0  ;;  %v77_v4 = vld [vmem:[%s2453_s0] sm:$0xff]  ;;  %v80_v8 = vld [vmem:[%s2453_s0 + $0x18] sm:$0xff]  ;;  %1666 = vmatpush3.bf16.msra.mxu1 %v2015_v3  ;;  %v2030_v10 = vld [vmem:[#allocation2 + $0x10] sm:$0xff]   ;;  %v30_v13 = vand.u32 127, %v29_v12  ;;  %v1976_v20 = vmov 0.5  }
  0x15   :  { %1656 = vmatpush3.bf16.msra.mxu0 %v108_v2  ;;  %v85_v6 = vpack.c.bf16 %v78_v5, %v77_v4  ;;  %v86_v9 = vpack.c.bf16 %v80_v8, %v79_v7  ;;  %1667 = vmatprep.subr.bf16.mxu1 %v1973_v0  ;;  %v2048_v14 = vld [vmem:[%s2455_s2] ss:$0 sm:$0xff]  ;;  %s1977_s8 = smov 32   ;;  %v2070_v38 = vld [vmem:[#allocation2 + $0x18] sm:$0xff]   ;;  %v2078_v40 = vld [vmem:[#allocation2 + $0x28] sm:$0xff]   ;;  %vm187_vm6 = vcmask 261120  }
  0x16   :  { %1701 = vmatprep.subr.bf16.mxu0 %v1973_v0  ;;  %vm31_vm3 = vcmp.ge.s32.totalorder %v30_v13, 64  ;;  %vm32_vm4 = vcmp.lt.s32.totalorder %v30_v13, 96  ;;  %v2074_v39 = vld [vmem:[#allocation2 + $0x20] sm:$0xff]   ;;  %v2082_v43 = vld [vmem:[#allocation2 + $0x30] sm:$0xff]   ;;  %vm352_vm7 = vcmask 523264  }
  0x17   :  { %1657 = vmatprep.mubr.msk.bf16.mxu0 %vm93_vm2, %v85_v6  ;;  %vm33_vm5 = vmand %vm31_vm3, %vm32_vm4  ;;  %v2113_v56 = vld [vmem:[%s2455_s2 + $0x8] ss:$0 sm:$0xff] }
  0x18   :  { %1658 = vmatmul.mubr.msk.bf16.vlgmr.msra.gmra.mrb[0].mxu0 %vm93_vm2, %v86_v9  ;;  %1668 = vmatpush3.bf16.msra.mxu1 %v2030_v10  ;;  %v2057_v21 = vsel %vm33_vm5, 1.0, %v1976_v20  ;;  %v2060_v29 = vsel %vm33_vm5, 0.0, %v1976_v20 }
  0x19   :  { %1673 = vmatprep.subr.bf16.mxu1 %v1973_v0  ;;  %1702 = vmatpush3.bf16.msra.mxu0 %v2070_v38 }
  0x1a   :  { %1703 = vmatprep.subr.bf16.mxu0 %v1973_v0 }
  0x1b   :  { %1670 = vmatmul.mubr.bf16.vlgmr.msra.gmra.mrb[0].mxu1 %v1975_v11 }
  0x1c   :  { %1674 = vmatpush3.bf16.msra.mxu1 %v2015_v3  ;;  %1677 = vmatprep.mubr.msk.bf16.mxu1 %vm1974_vm0, %v1973_v0 }
  0x1d   :  { %1675 = vmatprep.subr.bf16.mxu1 %v1973_v0  ;;  %1704 = vmatpush3.bf16.msra.mxu0 %v2074_v39 }
  0x1e   :  { %1705 = vmatprep.subr.bf16.mxu0 %v1973_v0 }
  0x20   :  { %1676 = vmatpush3.bf16.msra.mxu1 %v2030_v10 }
  0x21   :  { %1681 = vmatprep.subr.bf16.mxu1 %v1973_v0  ;;  %1706 = vmatpush3.bf16.msra.mxu0 %v2078_v40 }
  0x22   :  { %1707 = vmatprep.subr.bf16.mxu0 %v1973_v0 }
  0x25   :  { %1708 = vmatpush3.bf16.msra.mxu0 %v2082_v43 }
  0x26   :  { %1733 = vmatprep.subr.bf16.mxu0 %v1973_v0 }
  0xeb   :  { %v2050_v15 = vpop.f32.mrb[0].mxu0 }
  0xec   :  { %v144_v16 = vpop.f32.mrb[1].mxu0 }
  0xed   :  { %v145_v17 = vadd.f32 %v2048_v14, %v144_v16  ;;  %v2053_v18 = vpop.f32.mrb[2].mxu0 }
  0xee   :  { %v2055_v19 = vpop.f32.mrb[3].mxu0  ;;  %v225_v22 = vpop.f32.mrb[0].mxu1 }
  0xef   :  { %v231_v23 = vadd.f32 %v225_v22, %v145_v17  ;;  %v1671_v24 = vpop.f32.mrb[1].mxu1  ;;  %v148_v49 = vadd.f32 %v2048_v14, %v2055_v19 }
  0xf0   :  { %v228_v25 = vpop.f32.mrb[2].mxu1 }
  0xf1   :  { %v232_v26 = vmul.f32 %v231_v23, %v2057_v21  ;;  %v1672_v27 = vpop.f32.mrb[3].mxu1  ;;  %v81_v25 = vld [vmem:[%s2453_s0 + $0x20] sm:$0xff] }
  0xf2   :  { %v83_v27 = vld [vmem:[%s2453_s0 + $0x30] sm:$0xff] }
  0xf3   :  { %1878 = vtanh.f32 %v232_v26  ;;  %v82_v26 = vld [vmem:[%s2453_s0 + $0x28] sm:$0xff] }
  0xfd   :  { %v1879_v28 = vpop.eup %1878 }
  0xfe   :  { %v234_v30 = vmul.f32 %v1879_v28, %v2057_v21  ;;  %v87_v28 = vpack.c.bf16 %v82_v26, %v81_v25 }
 0x100   :  { %v235_v31 = vadd.f32 %v234_v30, %v2060_v29  ;;  %v84_v30 = vld [vmem:[%s2453_s0 + $0x38] sm:$0xff]  ;;  %1661 = vmatprep.mubr.msk.bf16.mxu0 %vm93_vm2, %v87_v28 }
 0x102   :  { %238 = vrot.lane.b32.xlu0 %v235_v31, %s1971_s22  ;;  %v236_v34 = vmul.f32 0.0, %v235_v31 }
 0x174   :  { %v239_v32 = vpop.permute.xlu0 %238 }
 0x175   :  { %v241_v33 = vmul.f32 %v239_v32, %v235_v31 }
 0x177   :  { %243 = vrot.lane.b32.xlu0 %v241_v33, %s1977_s8 }
 0x1e9   :  { %v244_v35 = vpop.permute.xlu0 %243 }
 0x1ea   :  { %v2066_v36 = vadd.f32 %v244_v35, %v236_v34 }
 0x1ec   :  { %1880 = vtanh.f32 %v2066_v36 }
 0x1f6   :  { %v1881_v37 = vpop.eup %1880 }
 0x1f7   :  { %249 = vrot.lane.b32.xlu1 %v1881_v37, %s1971_s22 }
 0x269   :  { %v250_v41 = vpop.permute.xlu1 %249 }
 0x26a   :  { %v252_v42 = vmul.f32 %v250_v41, %v235_v31  ;;  %v88_v31 = vpack.c.bf16 %v84_v30, %v83_v27 }
 0x26c   :  { %v253_v44 = vpack.c.bf16 %v252_v42, %v252_v42  ;;  %323 = vrot.lane.b32.xlu0 %v252_v42, %s1977_s8  ;;  %1662 = vmatmul.mubr.msk.bf16.gmra.mrb[4].mxu0 %vm93_vm2, %v88_v31 }
 0x26d   :  { %1709 = vmatprep.mubr.msk.bf16.mxu0 %vm1974_vm0, %v1973_v0 }
 0x26e   :  { %255 = vrot.lane.b32.xlu1 %v253_v44, %s1977_s8 }
 0x2de   :  { %v324_v46 = vpop.permute.xlu0 %323 }
 0x2df   :  { %v326_v47 = vsel %vm187_vm6, %v324_v46, 0.0 }
 0x2e0   :  { %v256_v45 = vpop.permute.xlu1 %255  ;;  %v327_v48 = vpack.c.bf16 %v326_v47, %v326_v47 }
 0x2e1   :  { %1678 = vmatmul.mubr.msk.bf16.vlgmr.msra.gmra.mrb[4].mxu1 %vm187_vm6, %v256_v45 }
 0x2e2   :  { %1682 = vmatpush3.bf16.msra.mxu1 %v2070_v38  ;;  %1689 = vmatprep.mubr.msk.bf16.mxu1 %vm1974_vm0, %v1973_v0 }
 0x2e3   :  { %1683 = vmatprep.subr.bf16.mxu1 %v1973_v0 }
 0x2e6   :  { %1684 = vmatpush3.bf16.msra.mxu1 %v2074_v39 }
 0x2e7   :  { %1685 = vmatprep.subr.bf16.mxu1 %v1973_v0 }
 0x2ea   :  { %1686 = vmatpush3.bf16.msra.mxu1 %v2078_v40 }
 0x2eb   :  { %1687 = vmatprep.subr.bf16.mxu1 %v1973_v0 }
 0x2ee   :  { %1688 = vmatpush3.bf16.msra.mxu1 %v2082_v43 }
 0x2ef   :  { %1693 = vmatprep.subr.bf16.mxu1 %v1973_v0 }
 0x2f1   :  { %1690 = vmatmul.mubr.msk.bf16.vlgmr.msra.gmra.mrb[8].mxu1 %vm352_vm7, %v327_v48 }
 0x2f2   :  { %1694 = vmatpush3.bf16.msra.mxu1 %v2015_v3  ;;  %1697 = vmatprep.mubr.msk.bf16.mxu1 %vm1974_vm0, %v1973_v0 }
 0x2f3   :  { %1695 = vmatprep.subr.bf16.mxu1 %v1973_v0 }
 0x2f6   :  { %1696 = vmatpush3.bf16.msra.mxu1 %v2030_v10 }
 0x2f7   :  { %1713 = vmatprep.subr.bf16.mxu1 %v1973_v0 }
 0x33f   :  { %v2168_v46 = vpop.f32.mrb[4].mxu0 }
 0x340   :  { %v2170_v47 = vpop.f32.mrb[5].mxu0 }
 0x341   :  { %v2172_v48 = vpop.f32.mrb[6].mxu0 }
 0x3b4   :  { %v294_v50 = vpop.f32.mrb[4].mxu1 }
 0x3b5   :  { %v300_v51 = vadd.f32 %v294_v50, %v148_v49  ;;  %v1679_v52 = vpop.f32.mrb[5].mxu1  ;;  %v2174_v49 = vpop.f32.mrb[7].mxu0  ;;  %v153_v50 = vadd.f32 %v2050_v15, %v2048_v14 }
 0x3b6   :  { %v297_v53 = vpop.f32.mrb[6].mxu1 }
 0x3b7   :  { %v301_v54 = vmul.f32 %v300_v51, %v2057_v21  ;;  %v1680_v55 = vpop.f32.mrb[7].mxu1 }
 0x3b9   :  { %1882 = vtanh.f32 %v301_v54 }
 0x3c3   :  { %v1883_v57 = vpop.eup %1882 }
 0x3c4   :  { %v390_v58 = vpop.f32.mrb[8].mxu1  ;;  %v303_v59 = vmul.f32 %v1883_v57, %v2057_v21 }
 0x3c5   :  { %v391_v60 = vadd.f32 %v2113_v56, %v390_v58  ;;  %v1691_v61 = vpop.f32.mrb[9].mxu1 }
 0x3c6   :  { %v393_v62 = vpop.f32.mrb[10].mxu1  ;;  %v304_v63 = vadd.f32 %v303_v59, %v2060_v29 }
 0x3c7   :  { %v396_v1 = vmul.f32 %v391_v60, %v2057_v21  ;;  %v1692_v2 = vpop.f32.mrb[11].mxu1 }
 0x3c8   :  { %307 = vrot.lane.b32.xlu1 %v304_v63, %s1971_s22  ;;  %v305_v13 = vmul.f32 %v304_v63, %v2066_v36 }
 0x3c9   :  { %1884 = vtanh.f32 %v396_v1 }
 0x3d3   :  { %v1885_v4 = vpop.eup %1884 }
 0x3d4   :  { %v398_v5 = vmul.f32 %v1885_v4, %v2057_v21 }
 0x3d6   :  { %v399_v6 = vadd.f32 %v398_v5, %v2060_v29 }
 0x3d8   :  { %402 = vrot.lane.b32.xlu0 %v399_v6, %s1971_s22  ;;  %v400_v20 = vmul.f32 0.0, %v399_v6 }
 0x43a   :  { %v308_v7 = vpop.permute.xlu1 %307 }
 0x43b   :  { %v310_v8 = vmul.f32 %v308_v7, %v304_v63 }
 0x43d   :  { %312 = vrot.lane.b32.xlu1 %v310_v8, %s1977_s8 }
 0x44a   :  { %v403_v9 = vpop.permute.xlu0 %402 }
 0x44b   :  { %v405_v11 = vmul.f32 %v403_v9, %v399_v6 }
 0x44d   :  { %407 = vrot.lane.b32.xlu0 %v405_v11, %s1977_s8 }
 0x4af   :  { %v313_v16 = vpop.permute.xlu1 %312 }
 0x4b0   :  { %v2126_v17 = vadd.f32 %v313_v16, %v305_v13 }
 0x4b2   :  { %1886 = vtanh.f32 %v2126_v17 }
 0x4bc   :  { %v1887_v19 = vpop.eup %1886 }
 0x4bd   :  { %318 = vrot.lane.b32.xlu1 %v1887_v19, %s1971_s22 }
 0x4bf   :  { %v408_v22 = vpop.permute.xlu0 %407 }
 0x4c0   :  { %v2130_v23 = vadd.f32 %v408_v22, %v400_v20 }
 0x4c2   :  { %1888 = vtanh.f32 %v2130_v23 }
 0x4cc   :  { %v1889_v24 = vpop.eup %1888 }
 0x4cd   :  { %413 = vrot.lane.b32.xlu0 %v1889_v24, %s1971_s22 }
 0x52f   :  { %v319_v32 = vpop.permute.xlu1 %318 }
 0x530   :  { %v321_v33 = vmul.f32 %v319_v32, %v304_v63 }
 0x532   :  { %v417_v34 = vpack.c.bf16 %v321_v33, %v321_v33  ;;  %487 = vrot.lane.b32.xlu0 %v321_v33, %s1977_s8 }
 0x534   :  { %419 = vrot.lane.b32.xlu1 %v417_v34, %s1977_s8 }
 0x53f   :  { %v414_v35 = vpop.permute.xlu0 %413 }
 0x540   :  { %v416_v36 = vmul.f32 %v414_v35, %v399_v6 }
 0x542   :  { %491 = vrot.lane.b32.xlu1 %v416_v36, %s1971_s22  ;;  %v156_v36 = vadd.f32 %v2053_v18, %v2048_v14 }
 0x5a4   :  { %v488_v41 = vpop.permute.xlu0 %487 }
 0x5a6   :  { %v420_v37 = vpop.permute.xlu1 %419 }
 0x5a7   :  { %1698 = vmatmul.mubr.msk.bf16.vlgmr.msra.gmra.mrb[12].mxu1 %vm187_vm6, %v420_v37 }
 0x5a8   :  { %1714 = vmatpush3.bf16.msra.mxu1 %v2015_v3  ;;  %1717 = vmatprep.mubr.msk.bf16.mxu1 %vm1974_vm0, %v1973_v0 }
 0x5a9   :  { %1715 = vmatprep.subr.bf16.mxu1 %v1973_v0 }
 0x5ac   :  { %1716 = vmatpush3.bf16.msra.mxu1 %v2030_v10 }
 0x5ad   :  { %1721 = vmatprep.subr.bf16.mxu1 %v1973_v0 }
 0x5b4   :  { %v492_v42 = vpop.permute.xlu1 %491 }
 0x5b5   :  { %v494_v44 = vsel %vm187_vm6, %v488_v41, %v492_v42 }
 0x5b6   :  { %v495_v45 = vpack.c.bf16 %v494_v44, %v494_v44 }
 0x5b8   :  { %1710 = vmatmul.mubr.msk.bf16.vlgmr.msra.gmra.mrb[8].mxu0 %vm352_vm7, %v495_v45 }
 0x5b9   :  { %1734 = vmatpush3.bf16.msra.mxu0 %v2015_v3  ;;  %1737 = vmatprep.mubr.msk.bf16.mxu0 %vm1974_vm0, %v1973_v0 }
 0x5ba   :  { %1735 = vmatprep.subr.bf16.mxu0 %v1973_v0 }
 0x5bd   :  { %1736 = vmatpush3.bf16.msra.mxu0 %v2030_v10 }
 0x5be   :  { %1741 = vmatprep.subr.bf16.mxu0 %v1973_v0 }
 0x67a   :  { %v458_v51 = vpop.f32.mrb[12].mxu1 }
 0x67b   :  { %v464_v52 = vadd.f32 %v458_v51, %v153_v50  ;;  %v1699_v53 = vpop.f32.mrb[13].mxu1 }
 0x67c   :  { %v461_v54 = vpop.f32.mrb[14].mxu1 }
 0x67d   :  { %v465_v55 = vmul.f32 %v464_v52, %v2057_v21  ;;  %v1700_v57 = vpop.f32.mrb[15].mxu1 }
 0x67f   :  { %1890 = vtanh.f32 %v465_v55 }
 0x689   :  { %v1891_v58 = vpop.eup %1890 }
 0x68a   :  { %v467_v59 = vmul.f32 %v1891_v58, %v2057_v21 }
 0x68b   :  { %v533_v60 = vpop.f32.mrb[8].mxu0 }
 0x68c   :  { %v534_v61 = vadd.f32 %v2113_v56, %v533_v60  ;;  %v1711_v62 = vpop.f32.mrb[9].mxu0  ;;  %v468_v63 = vadd.f32 %v467_v59, %v2060_v29 }
 0x68d   :  { %v536_v1 = vpop.f32.mrb[10].mxu0 }
 0x68e   :  { %v539_v15 = vmul.f32 %v534_v61, %v2057_v21  ;;  %v1712_v2 = vpop.f32.mrb[11].mxu0  ;;  %471 = vrot.lane.b32.xlu0 %v468_v63, %s1971_s22  ;;  %v469_v13 = vmul.f32 %v468_v63, %v2126_v17 }
 0x690   :  { %1892 = vtanh.f32 %v539_v15 }
 0x69a   :  { %v1893_v4 = vpop.eup %1892 }
 0x69b   :  { %v541_v5 = vmul.f32 %v1893_v4, %v2057_v21 }
 0x69d   :  { %v542_v6 = vadd.f32 %v541_v5, %v2060_v29 }
 0x69f   :  { %545 = vrot.lane.b32.xlu1 %v542_v6, %s1971_s22  ;;  %v543_v22 = vmul.f32 %v542_v6, %v2130_v23 }
 0x700   :  { %v472_v7 = vpop.permute.xlu0 %471 }
 0x701   :  { %v474_v8 = vmul.f32 %v472_v7, %v468_v63 }
 0x703   :  { %476 = vrot.lane.b32.xlu0 %v474_v8, %s1977_s8 }
 0x711   :  { %v546_v9 = vpop.permute.xlu1 %545 }
 0x712   :  { %v548_v11 = vmul.f32 %v546_v9, %v542_v6 }
 0x714   :  { %550 = vrot.lane.b32.xlu1 %v548_v11, %s1977_s8 }
 0x775   :  { %v477_v16 = vpop.permute.xlu0 %476 }
 0x776   :  { %v2190_v19 = vadd.f32 %v477_v16, %v469_v13 }
 0x778   :  { %1894 = vtanh.f32 %v2190_v19 }
 0x782   :  { %v1895_v20 = vpop.eup %1894 }
 0x783   :  { %482 = vrot.lane.b32.xlu0 %v1895_v20, %s1971_s22 }
 0x786   :  { %v551_v24 = vpop.permute.xlu1 %550 }
 0x787   :  { %v2195_v25 = vadd.f32 %v551_v24, %v543_v22 }
 0x789   :  { %1896 = vtanh.f32 %v2195_v25 }
 0x793   :  { %v1897_v26 = vpop.eup %1896 }
 0x794   :  { %556 = vrot.lane.b32.xlu1 %v1897_v26, %s1971_s22 }
 0x7f5   :  { %v483_v27 = vpop.permute.xlu0 %482 }
 0x7f6   :  { %v485_v17 = vmul.f32 %v483_v27, %v468_v63 }
 0x7f8   :  { %v560_v28 = vpack.c.bf16 %v485_v17, %v485_v17  ;;  %630 = vrot.lane.b32.xlu1 %v485_v17, %s1977_s8 }
 0x7fa   :  { %562 = vrot.lane.b32.xlu0 %v560_v28, %s1977_s8 }
 0x806   :  { %v557_v30 = vpop.permute.xlu1 %556 }
 0x807   :  { %v559_v31 = vmul.f32 %v557_v30, %v542_v6  ;;  %v161_v30 = vadd.f32 %v2048_v14, %v2170_v47 }
 0x809   :  { %634 = vrot.lane.b32.xlu0 %v559_v31, %s1971_s22 }
 0x86a   :  { %v631_v32 = vpop.permute.xlu1 %630 }
 0x86c   :  { %v563_v23 = vpop.permute.xlu0 %562 }
 0x86d   :  { %1718 = vmatmul.mubr.msk.bf16.vlgmr.msra.gmra.mrb[16].mxu1 %vm187_vm6, %v563_v23 }
 0x86e   :  { %1722 = vmatpush3.bf16.msra.mxu1 %v2070_v38  ;;  %1729 = vmatprep.mubr.msk.bf16.mxu1 %vm1974_vm0, %v1973_v0 }
 0x86f   :  { %1723 = vmatprep.subr.bf16.mxu1 %v1973_v0 }
 0x872   :  { %1724 = vmatpush3.bf16.msra.mxu1 %v2074_v39 }
 0x873   :  { %1725 = vmatprep.subr.bf16.mxu1 %v1973_v0 }
 0x876   :  { %1726 = vmatpush3.bf16.msra.mxu1 %v2078_v40 }
 0x877   :  { %1727 = vmatprep.subr.bf16.mxu1 %v1973_v0 }
 0x87a   :  { %1728 = vmatpush3.bf16.msra.mxu1 %v2082_v43 }
 0x87b   :  { %v635_v33 = vpop.permute.xlu0 %634  ;;  %1753 = vmatprep.subr.bf16.mxu1 %v1973_v0 }
 0x87c   :  { %v637_v34 = vsel %vm187_vm6, %v631_v32, %v635_v33 }
 0x87d   :  { %v638_v35 = vpack.c.bf16 %v637_v34, %v637_v34 }
 0x87f   :  { %1730 = vmatmul.mubr.msk.bf16.vlgmr.msra.gmra.mrb[20].mxu1 %vm352_vm7, %v638_v35 }
 0x880   :  { %1754 = vmatpush3.bf16.msra.mxu1 %v2015_v3  ;;  %1757 = vmatprep.mubr.msk.bf16.mxu1 %vm1974_vm0, %v1973_v0 }
 0x881   :  { %1755 = vmatprep.subr.bf16.mxu1 %v1973_v0 }
 0x884   :  { %1756 = vmatpush3.bf16.msra.mxu1 %v2030_v10 }
 0x885   :  { %1761 = vmatprep.subr.bf16.mxu1 %v1973_v0 }
 0x940   :  { %v601_v37 = vpop.f32.mrb[16].mxu1 }
 0x941   :  { %v607_v41 = vadd.f32 %v601_v37, %v156_v36  ;;  %v1719_v42 = vpop.f32.mrb[17].mxu1 }
 0x942   :  { %v604_v44 = vpop.f32.mrb[18].mxu1 }
 0x943   :  { %v608_v45 = vmul.f32 %v607_v41, %v2057_v21  ;;  %v1720_v50 = vpop.f32.mrb[19].mxu1 }
 0x945   :  { %1898 = vtanh.f32 %v608_v45 }
 0x94f   :  { %v1899_v51 = vpop.eup %1898 }
 0x950   :  { %v610_v52 = vmul.f32 %v1899_v51, %v2057_v21 }
 0x952   :  { %v676_v53 = vpop.f32.mrb[20].mxu1  ;;  %v611_v54 = vadd.f32 %v610_v52, %v2060_v29 }
 0x953   :  { %v677_v55 = vadd.f32 %v2113_v56, %v676_v53  ;;  %v1731_v57 = vpop.f32.mrb[21].mxu1 }
 0x954   :  { %v679_v58 = vpop.f32.mrb[22].mxu1  ;;  %614 = vrot.lane.b32.xlu1 %v611_v54, %s1971_s22  ;;  %v612_v4 = vmul.f32 %v611_v54, %v2190_v19 }
 0x955   :  { %v682_v18 = vmul.f32 %v677_v55, %v2057_v21  ;;  %v1732_v59 = vpop.f32.mrb[23].mxu1 }
 0x957   :  { %1900 = vtanh.f32 %v682_v18 }
 0x961   :  { %v1901_v60 = vpop.eup %1900 }
 0x962   :  { %v684_v61 = vmul.f32 %v1901_v60, %v2057_v21 }
 0x964   :  { %v685_v62 = vadd.f32 %v684_v61, %v2060_v29 }
 0x966   :  { %688 = vrot.lane.b32.xlu0 %v685_v62, %s1971_s22  ;;  %v686_v8 = vmul.f32 %v685_v62, %v2195_v25 }
 0x9c6   :  { %v615_v63 = vpop.permute.xlu1 %614 }
 0x9c7   :  { %v617_v1 = vmul.f32 %v615_v63, %v611_v54 }
 0x9c9   :  { %619 = vrot.lane.b32.xlu1 %v617_v1, %s1977_s8 }
 0x9d8   :  { %v689_v15 = vpop.permute.xlu0 %688 }
 0x9d9   :  { %v691_v2 = vmul.f32 %v689_v15, %v685_v62 }
 0x9db   :  { %693 = vrot.lane.b32.xlu0 %v691_v2, %s1977_s8 }
 0xa3b   :  { %v620_v5 = vpop.permute.xlu1 %619 }
 0xa3c   :  { %v2235_v6 = vadd.f32 %v620_v5, %v612_v4 }
 0xa3e   :  { %1902 = vtanh.f32 %v2235_v6 }
 0xa48   :  { %v1903_v7 = vpop.eup %1902 }
 0xa49   :  { %625 = vrot.lane.b32.xlu1 %v1903_v7, %s1971_s22 }
 0xa4d   :  { %v694_v9 = vpop.permute.xlu0 %693 }
 0xa4e   :  { %v2240_v11 = vadd.f32 %v694_v9, %v686_v8 }
 0xa50   :  { %1904 = vtanh.f32 %v2240_v11 }
 0xa5a   :  { %v1905_v13 = vpop.eup %1904 }
 0xa5b   :  { %699 = vrot.lane.b32.xlu0 %v1905_v13, %s1971_s22 }
 0xabb   :  { %v626_v16 = vpop.permute.xlu1 %625 }
 0xabc   :  { %v628_v19 = vmul.f32 %v626_v16, %v611_v54 }
 0xabe   :  { %v703_v20 = vpack.c.bf16 %v628_v19, %v628_v19  ;;  %773 = vrot.lane.b32.xlu0 %v628_v19, %s1977_s8 }
 0xac0   :  { %705 = vrot.lane.b32.xlu1 %v703_v20, %s1977_s8  ;;  %v164_v20 = vadd.f32 %v2048_v14, %v2174_v49 }
 0xacd   :  { %v700_v22 = vpop.permute.xlu0 %699 }
 0xace   :  { %v702_v24 = vmul.f32 %v700_v22, %v685_v62 }
 0xad0   :  { %777 = vrot.lane.b32.xlu1 %v702_v24, %s1971_s22 }
 0xb30   :  { %v774_v26 = vpop.permute.xlu0 %773 }
 0xb32   :  { %v706_v25 = vpop.permute.xlu1 %705 }
 0xb33   :  { %1738 = vmatmul.mubr.msk.bf16.vlgmr.msra.gmra.mrb[12].mxu0 %vm187_vm6, %v706_v25 }
 0xb34   :  { %1742 = vmatpush3.bf16.msra.mxu0 %v2070_v38  ;;  %1749 = vmatprep.mubr.msk.bf16.mxu0 %vm1974_vm0, %v1973_v0 }
 0xb35   :  { %1743 = vmatprep.subr.bf16.mxu0 %v1973_v0 }
 0xb38   :  { %1744 = vmatpush3.bf16.msra.mxu0 %v2074_v39 }
 0xb39   :  { %1745 = vmatprep.subr.bf16.mxu0 %v1973_v0 }
 0xb3c   :  { %1746 = vmatpush3.bf16.msra.mxu0 %v2078_v40 }
 0xb3d   :  { %1747 = vmatprep.subr.bf16.mxu0 %v1973_v0 }
 0xb40   :  { %1748 = vmatpush3.bf16.msra.mxu0 %v2082_v43 }
 0xb41   :  { %1773 = vmatprep.subr.bf16.mxu0 %v1973_v0 }
 0xb42   :  { %v778_v27 = vpop.permute.xlu1 %777 }
 0xb43   :  { %v780_v17 = vsel %vm187_vm6, %v774_v26, %v778_v27 }
 0xb44   :  { %v781_v28 = vpack.c.bf16 %v780_v17, %v780_v17 }
 0xb46   :  { %1750 = vmatmul.mubr.msk.bf16.vlgmr.msra.gmra.mrb[16].mxu0 %vm352_vm7, %v781_v28 }
 0xb47   :  { %1774 = vmatpush3.bf16.msra.mxu0 %v2015_v3  ;;  %1777 = vmatprep.mubr.msk.bf16.mxu0 %vm1974_vm0, %v1973_v0 }
 0xb48   :  { %1775 = vmatprep.subr.bf16.mxu0 %v1973_v0 }
 0xb4b   :  { %1776 = vmatpush3.bf16.msra.mxu0 %v2030_v10 }
 0xb4c   :  { %1781 = vmatprep.subr.bf16.mxu0 %v1973_v0 }
 0xc06   :  { %v744_v31 = vpop.f32.mrb[12].mxu0 }
 0xc07   :  { %v750_v23 = vadd.f32 %v744_v31, %v161_v30  ;;  %v1739_v32 = vpop.f32.mrb[13].mxu0 }
 0xc08   :  { %v747_v33 = vpop.f32.mrb[14].mxu0 }
 0xc09   :  { %v751_v34 = vmul.f32 %v750_v23, %v2057_v21  ;;  %v1740_v35 = vpop.f32.mrb[15].mxu0 }
 0xc0b   :  { %1906 = vtanh.f32 %v751_v34 }
 0xc15   :  { %v1907_v36 = vpop.eup %1906 }
 0xc16   :  { %v753_v37 = vmul.f32 %v1907_v36, %v2057_v21 }
 0xc18   :  { %v754_v41 = vadd.f32 %v753_v37, %v2060_v29 }
 0xc19   :  { %v819_v42 = vpop.f32.mrb[16].mxu0 }
 0xc1a   :  { %v820_v44 = vadd.f32 %v2113_v56, %v819_v42  ;;  %v1751_v45 = vpop.f32.mrb[17].mxu0  ;;  %757 = vrot.lane.b32.xlu0 %v754_v41, %s1971_s22  ;;  %v755_v59 = vmul.f32 %v754_v41, %v2235_v6 }
 0xc1b   :  { %v822_v47 = vpop.f32.mrb[18].mxu0 }
 0xc1c   :  { %v825_v50 = vmul.f32 %v820_v44, %v2057_v21  ;;  %v1752_v51 = vpop.f32.mrb[19].mxu0 }
 0xc1e   :  { %1908 = vtanh.f32 %v825_v50 }
 0xc28   :  { %v1909_v52 = vpop.eup %1908 }
 0xc29   :  { %v827_v53 = vmul.f32 %v1909_v52, %v2057_v21 }
 0xc2b   :  { %v828_v54 = vadd.f32 %v827_v53, %v2060_v29 }
 0xc2d   :  { %831 = vrot.lane.b32.xlu1 %v828_v54, %s1971_s22  ;;  %v829_v63 = vmul.f32 %v828_v54, %v2240_v11 }
 0xc8c   :  { %v758_v55 = vpop.permute.xlu0 %757 }
 0xc8d   :  { %v760_v57 = vmul.f32 %v758_v55, %v754_v41 }
 0xc8f   :  { %762 = vrot.lane.b32.xlu0 %v760_v57, %s1977_s8 }
 0xc9f   :  { %v832_v58 = vpop.permute.xlu1 %831 }
 0xca0   :  { %v834_v18 = vmul.f32 %v832_v58, %v828_v54 }
 0xca2   :  { %836 = vrot.lane.b32.xlu1 %v834_v18, %s1977_s8 }
 0xd01   :  { %v763_v60 = vpop.permute.xlu0 %762 }
 0xd02   :  { %v2280_v61 = vadd.f32 %v763_v60, %v755_v59 }
 0xd04   :  { %1910 = vtanh.f32 %v2280_v61 }
 0xd0e   :  { %v1911_v62 = vpop.eup %1910 }
 0xd0f   :  { %768 = vrot.lane.b32.xlu0 %v1911_v62, %s1971_s22 }
 0xd14   :  { %v837_v1 = vpop.permute.xlu1 %836 }
 0xd15   :  { %v2285_v15 = vadd.f32 %v837_v1, %v829_v63 }
 0xd17   :  { %1912 = vtanh.f32 %v2285_v15 }
 0xd21   :  { %v1913_v2 = vpop.eup %1912 }
 0xd22   :  { %842 = vrot.lane.b32.xlu1 %v1913_v2, %s1971_s22  ;;  %v169_v2 = vadd.f32 %v2168_v46, %v2048_v14 }
 0xd81   :  { %v769_v4 = vpop.permute.xlu0 %768 }
 0xd82   :  { %v771_v5 = vmul.f32 %v769_v4, %v754_v41 }
 0xd84   :  { %v846_v6 = vpack.c.bf16 %v771_v5, %v771_v5  ;;  %916 = vrot.lane.b32.xlu1 %v771_v5, %s1977_s8 }
 0xd86   :  { %848 = vrot.lane.b32.xlu0 %v846_v6, %s1977_s8 }
 0xd94   :  { %v843_v7 = vpop.permute.xlu1 %842 }
 0xd95   :  { %v845_v8 = vmul.f32 %v843_v7, %v828_v54 }
 0xd97   :  { %920 = vrot.lane.b32.xlu0 %v845_v8, %s1971_s22 }
 0xdf6   :  { %v917_v11 = vpop.permute.xlu1 %916 }
 0xdf8   :  { %v849_v9 = vpop.permute.xlu0 %848 }
 0xdf9   :  { %1758 = vmatmul.mubr.msk.bf16.vlgmr.msra.gmra.mrb[24].mxu1 %vm187_vm6, %v849_v9 }
 0xdfa   :  { %1762 = vmatpush3.bf16.msra.mxu1 %v2070_v38  ;;  %1769 = vmatprep.mubr.msk.bf16.mxu1 %vm1974_vm0, %v1973_v0 }
 0xdfb   :  { %1763 = vmatprep.subr.bf16.mxu1 %v1973_v0 }
 0xdfe   :  { %1764 = vmatpush3.bf16.msra.mxu1 %v2074_v39 }
 0xdff   :  { %1765 = vmatprep.subr.bf16.mxu1 %v1973_v0 }
 0xe02   :  { %1766 = vmatpush3.bf16.msra.mxu1 %v2078_v40 }
 0xe03   :  { %1767 = vmatprep.subr.bf16.mxu1 %v1973_v0 }
 0xe06   :  { %1768 = vmatpush3.bf16.msra.mxu1 %v2082_v43 }
 0xe07   :  { %1793 = vmatprep.subr.bf16.mxu1 %v1973_v0 }
 0xe09   :  { %v921_v13 = vpop.permute.xlu0 %920 }
 0xe0a   :  { %v923_v16 = vsel %vm187_vm6, %v917_v11, %v921_v13 }
 0xe0b   :  { %v924_v19 = vpack.c.bf16 %v923_v16, %v923_v16 }
 0xe0d   :  { %1770 = vmatmul.mubr.msk.bf16.vlgmr.msra.gmra.mrb[28].mxu1 %vm352_vm7, %v924_v19 }
 0xe0e   :  { %1794 = vmatpush3.bf16.msra.mxu1 %v2015_v3  ;;  %1797 = vmatprep.mubr.msk.bf16.mxu1 %vm1974_vm0, %v1973_v0 }
 0xe0f   :  { %1795 = vmatprep.subr.bf16.mxu1 %v1973_v0 }
 0xe12   :  { %1796 = vmatpush3.bf16.msra.mxu1 %v2030_v10 }
 0xe13   :  { %1801 = vmatprep.subr.bf16.mxu1 %v1973_v0 }
 0xecc   :  { %v887_v22 = vpop.f32.mrb[24].mxu1 }
 0xecd   :  { %v893_v24 = vadd.f32 %v887_v22, %v164_v20  ;;  %v1759_v25 = vpop.f32.mrb[25].mxu1 }
 0xece   :  { %v890_v26 = vpop.f32.mrb[26].mxu1 }
 0xecf   :  { %v894_v27 = vmul.f32 %v893_v24, %v2057_v21  ;;  %v1760_v17 = vpop.f32.mrb[27].mxu1 }
 0xed1   :  { %1914 = vtanh.f32 %v894_v27 }
 0xedb   :  { %v1915_v3 = vpop.eup %1914 }
 0xedc   :  { %v896_v28 = vmul.f32 %v1915_v3, %v2057_v21 }
 0xede   :  { %v897_v30 = vadd.f32 %v896_v28, %v2060_v29 }
 0xee0   :  { %v962_v31 = vpop.f32.mrb[28].mxu1  ;;  %900 = vrot.lane.b32.xlu1 %v897_v30, %s1971_s22  ;;  %v898_v45 = vmul.f32 %v897_v30, %v2280_v61 }
 0xee1   :  { %v963_v10 = vadd.f32 %v2113_v56, %v962_v31  ;;  %v1771_v23 = vpop.f32.mrb[29].mxu1 }
 0xee2   :  { %v965_v49 = vpop.f32.mrb[30].mxu1 }
 0xee3   :  { %v968_v32 = vmul.f32 %v963_v10, %v2057_v21  ;;  %v1772_v33 = vpop.f32.mrb[31].mxu1 }
 0xee5   :  { %1916 = vtanh.f32 %v968_v32 }
 0xeef   :  { %v1917_v34 = vpop.eup %1916 }
 0xef0   :  { %v970_v35 = vmul.f32 %v1917_v34, %v2057_v21 }
 0xef2   :  { %v971_v36 = vadd.f32 %v970_v35, %v2060_v29 }
 0xef4   :  { %974 = vrot.lane.b32.xlu0 %v971_v36, %s1971_s22  ;;  %v972_v52 = vmul.f32 %v971_v36, %v2285_v15 }
 0xf52   :  { %v901_v37 = vpop.permute.xlu1 %900 }
 0xf53   :  { %v903_v41 = vmul.f32 %v901_v37, %v897_v30 }
 0xf55   :  { %905 = vrot.lane.b32.xlu1 %v903_v41, %s1977_s8 }
 0xf66   :  { %v975_v42 = vpop.permute.xlu0 %974 }
 0xf67   :  { %v977_v44 = vmul.f32 %v975_v42, %v971_v36 }
 0xf69   :  { %979 = vrot.lane.b32.xlu0 %v977_v44, %s1977_s8 }
 0xfc7   :  { %v906_v47 = vpop.permute.xlu1 %905 }
 0xfc8   :  { %v2325_v50 = vadd.f32 %v906_v47, %v898_v45 }
 0xfca   :  { %1918 = vtanh.f32 %v2325_v50 }
 0xfd4   :  { %v1919_v51 = vpop.eup %1918 }
 0xfd5   :  { %911 = vrot.lane.b32.xlu1 %v1919_v51, %s1971_s22 }
 0xfdb   :  { %v980_v53 = vpop.permute.xlu0 %979 }
 0xfdc   :  { %v2330_v54 = vadd.f32 %v980_v53, %v972_v52 }
 0xfde   :  { %1920 = vtanh.f32 %v2330_v54 }
 0xfe8   :  { %v1921_v55 = vpop.eup %1920 }
 0xfe9   :  { %985 = vrot.lane.b32.xlu0 %v1921_v55, %s1971_s22 }
0x1047   :  { %v912_v57 = vpop.permute.xlu1 %911 }
0x1048   :  { %v914_v58 = vmul.f32 %v912_v57, %v897_v30 }
0x104a   :  { %v989_v18 = vpack.c.bf16 %v914_v58, %v914_v58  ;;  %1059 = vrot.lane.b32.xlu0 %v914_v58, %s1977_s8 }
0x104c   :  { %991 = vrot.lane.b32.xlu1 %v989_v18, %s1977_s8 }
0x105b   :  { %v986_v59 = vpop.permute.xlu0 %985 }
0x105c   :  { %v988_v60 = vmul.f32 %v986_v59, %v971_v36 }
0x105e   :  { %1063 = vrot.lane.b32.xlu1 %v988_v60, %s1971_s22 }
0x10bc   :  { %v1060_v62 = vpop.permute.xlu0 %1059 }
0x10be   :  { %v992_v61 = vpop.permute.xlu1 %991 }
0x10bf   :  { %1778 = vmatmul.mubr.msk.bf16.vlgmr.msra.gmra.mrb[20].mxu0 %vm187_vm6, %v992_v61 }
0x10c0   :  { %1782 = vmatpush3.bf16.msra.mxu0 %v2070_v38  ;;  %1789 = vmatprep.mubr.msk.bf16.mxu0 %vm1974_vm0, %v1973_v0 }
0x10c1   :  { %1783 = vmatprep.subr.bf16.mxu0 %v1973_v0 }
0x10c4   :  { %1784 = vmatpush3.bf16.msra.mxu0 %v2074_v39 }
0x10c5   :  { %1785 = vmatprep.subr.bf16.mxu0 %v1973_v0 }
0x10c8   :  { %1786 = vmatpush3.bf16.msra.mxu0 %v2078_v40 }
0x10c9   :  { %1787 = vmatprep.subr.bf16.mxu0 %v1973_v0 }
0x10cc   :  { %1788 = vmatpush3.bf16.msra.mxu0 %v2082_v43 }
0x10cd   :  { %1813 = vmatprep.subr.bf16.mxu0 %v1973_v0 }
0x10d0   :  { %v1064_v63 = vpop.permute.xlu1 %1063 }
0x10d1   :  { %v1066_v1 = vsel %vm187_vm6, %v1060_v62, %v1064_v63 }
0x10d2   :  { %v1067_v15 = vpack.c.bf16 %v1066_v1, %v1066_v1 }
0x10d4   :  { %1790 = vmatmul.mubr.msk.bf16.vlgmr.msra.gmra.mrb[24].mxu0 %vm352_vm7, %v1067_v15 }
0x10d5   :  { %1814 = vmatpush3.bf16.msra.mxu0 %v2070_v38  ;;  %1821 = vmatprep.mubr.msk.bf16.mxu0 %vm1974_vm0, %v1973_v0 }
0x10d6   :  { %1815 = vmatprep.subr.bf16.mxu0 %v1973_v0 }
0x10d9   :  { %1816 = vmatpush3.bf16.msra.mxu0 %v2074_v39 }
0x10da   :  { %1817 = vmatprep.subr.bf16.mxu0 %v1973_v0 }
0x10dd   :  { %1818 = vmatpush3.bf16.msra.mxu0 %v2078_v40 }
0x10de   :  { %1819 = vmatprep.subr.bf16.mxu0 %v1973_v0 }
0x10e1   :  { %1820 = vmatpush3.bf16.msra.mxu0 %v2082_v43 }
0x10e2   :  { %1833 = vmatprep.subr.bf16.mxu0 %v1973_v0 }
0x1192   :  { %v1030_v4 = vpop.f32.mrb[20].mxu0 }
0x1193   :  { %v1036_v5 = vadd.f32 %v1030_v4, %v169_v2  ;;  %v1779_v6 = vpop.f32.mrb[21].mxu0 }
0x1194   :  { %v1033_v7 = vpop.f32.mrb[22].mxu0 }
0x1195   :  { %v1037_v8 = vmul.f32 %v1036_v5, %v2057_v21  ;;  %v1780_v9 = vpop.f32.mrb[23].mxu0 }
0x1197   :  { %1922 = vtanh.f32 %v1037_v8 }
0x11a1   :  { %v1923_v11 = vpop.eup %1922 }
0x11a2   :  { %v1039_v13 = vmul.f32 %v1923_v11, %v2057_v21 }
0x11a4   :  { %v1040_v16 = vadd.f32 %v1039_v13, %v2060_v29 }
0x11a6   :  { %1043 = vrot.lane.b32.xlu0 %v1040_v16, %s1971_s22  ;;  %v1041_v10 = vmul.f32 %v1040_v16, %v2325_v50 }
0x11a7   :  { %v1105_v19 = vpop.f32.mrb[24].mxu0 }
0x11a8   :  { %v1106_v20 = vadd.f32 %v2113_v56, %v1105_v19  ;;  %v1791_v22 = vpop.f32.mrb[25].mxu0 }
0x11a9   :  { %v1108_v46 = vpop.f32.mrb[26].mxu0 }
0x11aa   :  { %v1111_v24 = vmul.f32 %v1106_v20, %v2057_v21  ;;  %v1792_v25 = vpop.f32.mrb[27].mxu0 }
0x11ac   :  { %1924 = vtanh.f32 %v1111_v24 }
0x11b6   :  { %v1925_v26 = vpop.eup %1924 }
0x11b7   :  { %v1113_v27 = vmul.f32 %v1925_v26, %v2057_v21 }
0x11b9   :  { %v1114_v17 = vadd.f32 %v1113_v27, %v2060_v29 }
0x11bb   :  { %1117 = vrot.lane.b32.xlu1 %v1114_v17, %s1971_s22  ;;  %v1115_v33 = vmul.f32 %v1114_v17, %v2330_v54 }
0x1218   :  { %v1044_v3 = vpop.permute.xlu0 %1043 }
0x1219   :  { %v1046_v28 = vmul.f32 %v1044_v3, %v1040_v16 }
0x121b   :  { %1048 = vrot.lane.b32.xlu0 %v1046_v28, %s1977_s8 }
0x122d   :  { %v1118_v30 = vpop.permute.xlu1 %1117 }
0x122e   :  { %v1120_v31 = vmul.f32 %v1118_v30, %v1114_v17 }
0x1230   :  { %1122 = vrot.lane.b32.xlu1 %v1120_v31, %s1977_s8 }
0x128d   :  { %v1049_v23 = vpop.permute.xlu0 %1048 }
0x128e   :  { %v2374_v49 = vadd.f32 %v1049_v23, %v1041_v10 }
0x1290   :  { %1926 = vtanh.f32 %v2374_v49 }
0x129a   :  { %v1927_v32 = vpop.eup %1926 }
0x129b   :  { %1054 = vrot.lane.b32.xlu0 %v1927_v32, %s1971_s22 }
0x12a2   :  { %v1123_v34 = vpop.permute.xlu1 %1122 }
0x12a3   :  { %v2379_v35 = vadd.f32 %v1123_v34, %v1115_v33 }
0x12a5   :  { %1928 = vtanh.f32 %v2379_v35 }
0x12af   :  { %v1929_v36 = vpop.eup %1928 }
0x12b0   :  { %1128 = vrot.lane.b32.xlu1 %v1929_v36, %s1971_s22 }
0x130d   :  { %v1055_v37 = vpop.permute.xlu0 %1054 }
0x130e   :  { %v1057_v41 = vmul.f32 %v1055_v37, %v1040_v16 }
0x1310   :  { %v1132_v42 = vpack.c.bf16 %v1057_v41, %v1057_v41  ;;  %1202 = vrot.lane.b32.xlu1 %v1057_v41, %s1977_s8 }
0x1312   :  { %1134 = vrot.lane.b32.xlu0 %v1132_v42, %s1977_s8 }
0x1322   :  { %v1129_v44 = vpop.permute.xlu1 %1128 }
0x1323   :  { %v1131_v45 = vmul.f32 %v1129_v44, %v1114_v17  ;;  %v1868_v44 = vld [vmem:[#allocation2 + $0x38] sm:$0xff]  }
0x1325   :  { %1206 = vrot.lane.b32.xlu0 %v1131_v45, %s1971_s22  ;;  %v1869_v45 = vld [vmem:[#allocation2 + $0x40] sm:$0xff]  }
0x1382   :  { %v1203_v50 = vpop.permute.xlu1 %1202 }
0x1384   :  { %v1135_v47 = vpop.permute.xlu0 %1134 }
0x1385   :  { %1798 = vmatmul.mubr.msk.bf16.vlgmr.msra.gmra.mrb[32].mxu1 %vm187_vm6, %v1135_v47 }
0x1386   :  { %1802 = vmatpush3.bf16.msra.mxu1 %v2070_v38  ;;  %1809 = vmatprep.mubr.msk.bf16.mxu1 %vm1974_vm0, %v1973_v0 }
0x1387   :  { %1803 = vmatprep.subr.bf16.mxu1 %v1973_v0 }
0x138a   :  { %1804 = vmatpush3.bf16.msra.mxu1 %v2074_v39  ;;  %v172_v39 = vadd.f32 %v2172_v48, %v2048_v14 }
0x138b   :  { %1805 = vmatprep.subr.bf16.mxu1 %v1973_v0 }
0x138e   :  { %1806 = vmatpush3.bf16.msra.mxu1 %v2078_v40 }
0x138f   :  { %1807 = vmatprep.subr.bf16.mxu1 %v1973_v0 }
0x1392   :  { %1808 = vmatpush3.bf16.msra.mxu1 %v2082_v43 }
0x1393   :  { %1825 = vmatprep.subr.bf16.mxu1 %v1973_v0 }
0x1397   :  { %v1207_v51 = vpop.permute.xlu0 %1206 }
0x1398   :  { %v1209_v38 = vsel %vm187_vm6, %v1203_v50, %v1207_v51  ;;  %v1872_v50 = vld [vmem:[#allocation2 + $0x58] sm:$0xff]  }
0x1399   :  { %v1210_v52 = vpack.c.bf16 %v1209_v38, %v1209_v38 }
0x139b   :  { %1810 = vmatmul.mubr.msk.bf16.vlgmr.msra.gmra.mrb[36].mxu1 %vm352_vm7, %v1210_v52  ;;  %v1873_v52 = vld [vmem:[#allocation2 + $0x60] sm:$0xff]  }
0x139c   :  { %1829 = vmatprep.mubr.msk.bf16.mxu1 %vm1974_vm0, %v1973_v0  ;;  %1826 = vmatpush3.bf16.msra.mxu1 %v1868_v44 }
0x139d   :  { %1827 = vmatprep.subr.bf16.mxu1 %v1973_v0 }
0x13a0   :  { %1828 = vmatpush3.bf16.msra.mxu1 %v1869_v45 }
0x1458   :  { %v1173_v40 = vpop.f32.mrb[32].mxu1 }
0x1459   :  { %v1179_v53 = vadd.f32 %v1173_v40, %v172_v39  ;;  %v1799_v54 = vpop.f32.mrb[33].mxu1  ;;  %v1874_v40 = vld [vmem:[#allocation2 + $0x68] sm:$0xff]  }
0x145a   :  { %v1176_v55 = vpop.f32.mrb[34].mxu1 }
0x145b   :  { %v1180_v43 = vmul.f32 %v1179_v53, %v2057_v21  ;;  %v1800_v57 = vpop.f32.mrb[35].mxu1  ;;  %v1875_v53 = vld [vmem:[#allocation2 + $0x70] sm:$0xff]   ;;  %v1876_v55 = vld [vmem:[#allocation2 + $0x78] sm:$0xff]  }
0x145c   :  { %v1561_v57 = vld [vmem:[%s2455_s2 + $0x10] ss:$0 sm:$0xff] }
0x145d   :  { %1930 = vtanh.f32 %v1180_v43  ;;  %v1877_v43 = vld [vmem:[#allocation2 + $0x80] sm:$0xff]  }
0x1467   :  { %v1931_v58 = vpop.eup %1930 }
0x1468   :  { %v1182_v18 = vmul.f32 %v1931_v58, %v2057_v21 }
0x146a   :  { %v1183_v59 = vadd.f32 %v1182_v18, %v2060_v29 }
0x146c   :  { %1186 = vrot.lane.b32.xlu1 %v1183_v59, %s1971_s22  ;;  %v1184_v8 = vmul.f32 %v1183_v59, %v2374_v49 }
0x146e   :  { %v1248_v60 = vpop.f32.mrb[36].mxu1 }
0x146f   :  { %v1249_v61 = vadd.f32 %v2113_v56, %v1248_v60  ;;  %v1811_v62 = vpop.f32.mrb[37].mxu1 }
0x1470   :  { %v1251_v14 = vpop.f32.mrb[38].mxu1 }
0x1471   :  { %v1254_v48 = vmul.f32 %v1249_v61, %v2057_v21  ;;  %v1812_v63 = vpop.f32.mrb[39].mxu1 }
0x1473   :  { %1932 = vtanh.f32 %v1254_v48  ;;  %v1507_v48 = vshrl.u32 %v29_v12, 7 }
0x1475   :  { %vm1508_vm8 = vcmp.lt.s32.totalorder %v1507_v48, 2 }
0x147d   :  { %v1933_v1 = vpop.eup %1932 }
0x147e   :  { %v1256_v15 = vmul.f32 %v1933_v1, %v2057_v21 }
0x1480   :  { %v1257_v2 = vadd.f32 %v1256_v15, %v2060_v29 }
0x1482   :  { %1260 = vrot.lane.b32.xlu0 %v1257_v2, %s1971_s22  ;;  %v1258_v16 = vmul.f32 %v1257_v2, %v2379_v35 }
0x14de   :  { %v1187_v4 = vpop.permute.xlu1 %1186 }
0x14df   :  { %v1189_v5 = vmul.f32 %v1187_v4, %v1183_v59 }
0x14e1   :  { %1191 = vrot.lane.b32.xlu1 %v1189_v5, %s1977_s8 }
0x14f4   :  { %v1261_v6 = vpop.permute.xlu0 %1260 }
0x14f5   :  { %v1263_v7 = vmul.f32 %v1261_v6, %v1257_v2 }
0x14f7   :  { %1265 = vrot.lane.b32.xlu0 %v1263_v7, %s1977_s8 }
0x1553   :  { %v1192_v9 = vpop.permute.xlu1 %1191 }
0x1554   :  { %v1194_v11 = vadd.f32 %v1192_v9, %v1184_v8 }
0x1556   :  { %1934 = vtanh.f32 %v1194_v11 }
0x1560   :  { %v1935_v13 = vpop.eup %1934 }
0x1561   :  { %1197 = vrot.lane.b32.xlu1 %v1935_v13, %s1971_s22 }
0x1569   :  { %v1266_v19 = vpop.permute.xlu0 %1265 }
0x156a   :  { %v1268_v20 = vadd.f32 %v1266_v19, %v1258_v16 }
0x156c   :  { %1936 = vtanh.f32 %v1268_v20 }
0x1576   :  { %v1937_v22 = vpop.eup %1936 }
0x1577   :  { %1271 = vrot.lane.b32.xlu0 %v1937_v22, %s1971_s22 }
0x15d3   :  { %v1198_v46 = vpop.permute.xlu1 %1197 }
0x15d4   :  { %v1200_v24 = vmul.f32 %v1198_v46, %v1183_v59 }
0x15d6   :  { %1276 = vrot.lane.b32.xlu1 %v1200_v24, %s1977_s8 }
0x15e9   :  { %v1272_v25 = vpop.permute.xlu0 %1271 }
0x15ea   :  { %v1274_v26 = vmul.f32 %v1272_v25, %v1257_v2 }
0x15ec   :  { %1280 = vrot.lane.b32.xlu0 %v1274_v26, %s1971_s22 }
0x1648   :  { %v1277_v27 = vpop.permute.xlu1 %1276 }
0x165e   :  { %v1281_v17 = vpop.permute.xlu0 %1280 }
0x165f   :  { %v1283_v3 = vsel %vm187_vm6, %v1277_v27, %v1281_v17 }
0x1660   :  { %v1284_v28 = vpack.c.bf16 %v1283_v3, %v1283_v3 }
0x1662   :  { %1822 = vmatmul.mubr.msk.bf16.vlgmr.msra.gmra.mrb[28].mxu0 %vm352_vm7, %v1284_v28 }
0x1663   :  { %1849 = vmatprep.mubr.msk.bf16.mxu0 %vm1974_vm0, %v1973_v0 }
0x1735   :  { %v1322_v30 = vpop.f32.mrb[28].mxu0 }
0x1736   :  { %v1323_v31 = vadd.f32 %v2113_v56, %v1322_v30  ;;  %v1823_v10 = vpop.f32.mrb[29].mxu0 }
0x1737   :  { %v1325_v23 = vpop.f32.mrb[30].mxu0 }
0x1738   :  { %v1328_v49 = vmul.f32 %v1323_v31, %v2057_v21  ;;  %v1824_v32 = vpop.f32.mrb[31].mxu0 }
0x173a   :  { %1938 = vtanh.f32 %v1328_v49 }
0x1744   :  { %v1939_v33 = vpop.eup %1938 }
0x1745   :  { %v1330_v34 = vmul.f32 %v1939_v33, %v2057_v21  ;;  %v1870_v21 = vld [vmem:[#allocation2 + $0x48] sm:$0xff]  }
0x1746   :  { %1834 = vmatpush3.bf16.msra.mxu0 %v1870_v21 }
0x1747   :  { %v1331_v35 = vadd.f32 %v1330_v34, %v2060_v29  ;;  %v1871_v29 = vld [vmem:[#allocation2 + $0x50] sm:$0xff]   ;;  %1835 = vmatprep.subr.bf16.mxu0 %v1973_v0 }
0x1749   :  { %1334 = vrot.lane.b32.xlu1 %v1331_v35, %s1971_s22  ;;  %v1332_v41 = vmul.f32 %v1331_v35, %v1268_v20 }
0x174a   :  { %1836 = vmatpush3.bf16.msra.mxu0 %v1871_v29 }
0x174b   :  { %1837 = vmatprep.subr.bf16.mxu0 %v1973_v0 }
0x174e   :  { %1838 = vmatpush3.bf16.msra.mxu0 %v1872_v50 }
0x174f   :  { %1839 = vmatprep.subr.bf16.mxu0 %v1973_v0 }
0x1752   :  { %1840 = vmatpush3.bf16.msra.mxu0 %v1873_v52 }
0x1753   :  { %1841 = vmatprep.subr.bf16.mxu0 %v1973_v0 }
0x1756   :  { %1842 = vmatpush3.bf16.msra.mxu0 %v1874_v40 }
0x1757   :  { %1843 = vmatprep.subr.bf16.mxu0 %v1973_v0 }
0x175a   :  { %1844 = vmatpush3.bf16.msra.mxu0 %v1875_v53 }
0x175b   :  { %1845 = vmatprep.subr.bf16.mxu0 %v1973_v0 }
0x175e   :  { %1846 = vmatpush3.bf16.msra.mxu0 %v1876_v55 }
0x175f   :  { %1847 = vmatprep.subr.bf16.mxu0 %v1973_v0  ;;  %v1565_v0 = vld [vmem:[%s2455_s2 + $0x18] ss:$0 sm:$0xff] }
0x1762   :  { %1848 = vmatpush3.bf16.msra.mxu0 %v1877_v43 }
0x17bb   :  { %v1335_v36 = vpop.permute.xlu1 %1334 }
0x17bc   :  { %v1337_v37 = vmul.f32 %v1335_v36, %v1331_v35 }
0x17be   :  { %1339 = vrot.lane.b32.xlu0 %v1337_v37, %s1977_s8 }
0x1830   :  { %v1340_v42 = vpop.permute.xlu0 %1339 }
0x1831   :  { %v1342_v56 = vadd.f32 %v1340_v42, %v1332_v41 }
0x1833   :  { %1940 = vtanh.f32 %v1342_v56 }
0x183d   :  { %v1941_v47 = vpop.eup %1940 }
0x183e   :  { %1345 = vrot.lane.b32.xlu1 %v1941_v47, %s1971_s22 }
0x18b0   :  { %v1346_v51 = vpop.permute.xlu1 %1345 }
0x18b1   :  { %v1348_v38 = vmul.f32 %v1346_v51, %v1331_v35 }
0x18b3   :  { %v1349_v39 = vpack.c.bf16 %v1348_v38, %v1348_v38 }
0x18b5   :  { %1355 = vrot.lane.b32.xlu0 %v1349_v39, %s1977_s8 }
0x1927   :  { %v1356_v54 = vpop.permute.xlu0 %1355 }
0x1928   :  { %1830 = vmatmul.mubr.msk.bf16.vlgmr.msra.gmra.mrb[40].mxu1 %vm187_vm6, %v1356_v54 }
0x19fb   :  { %v1406_v58 = vpop.f32.mrb[40].mxu1 }
0x19fc   :  { %v1407_v18 = vadd.f32 %v1561_v57, %v1406_v58  ;;  %v1831_v59 = vpop.f32.mrb[41].mxu1 }
0x19fd   :  { %v1409_v60 = vpop.f32.mrb[42].mxu1 }
0x19fe   :  { %v1412_v61 = vmax.f32 %v1407_v18, 0.0  ;;  %v1832_v62 = vpop.f32.mrb[43].mxu1 }
0x1a00   :  { %v1413_v14 = vpack.c.bf16 %v1412_v61, %v1412_v61 }
0x1a02   :  { %1850 = vmatmul.mubr.bf16.vlgmr.msra.gmra.mrb[32].mxu0 %v1413_v14 }
0x1ad5   :  { %v1500_v63 = vpop.f32.mrb[32].mxu0 }
0x1ad6   :  { %v1501_v1 = vadd.f32 %v1565_v0, %v1500_v63  ;;  %v1851_v15 = vpop.f32.mrb[33].mxu0 }
0x1ad7   :  { %v1503_v2 = vpop.f32.mrb[34].mxu0 }
0x1ad8   :  { %v1509_v4 = vsel %vm1508_vm8, %v1501_v1, -1e+30  ;;  %v1852_v5 = vpop.f32.mrb[35].mxu0 }
0x1ad9   :  { %v1510_v6 = vrot.slane %v1509_v4, 4 }
0x1adb   :  { %v1511_v7 = vmax.f32 %v1509_v4, %v1510_v6 }
0x1add   :  { %v1512_v8 = vrot.slane %v1511_v7, 2 }
0x1adf   :  { %v1513_v9 = vmax.f32 %v1511_v7, %v1512_v8 }
0x1ae1   :  { %v1514_v11 = vrot.slane %v1513_v9, 1 }
0x1ae3   :  { %v1515_v13 = vmax.f32 %v1513_v9, %v1514_v11 }
0x1ae5   :  { %v1516_v16 = vsub.f32 %v1509_v4, %v1515_v13 }
0x1ae7   :  { %v1517_v12 = vmul.f32 1.442695, %v1516_v16 }
0x1ae9   :  { %1942 = vpow2.f32 %v1517_v12 }
0x1af3   :  { %v1943_v19 = vpop.eup %1942 }
0x1af4   :  { %v1519_v20 = vsel %vm1508_vm8, %v1943_v19, 0.0 }
0x1af5   :  { %v1520_v22 = vrot.slane %v1519_v20, 4 }
0x1af7   :  { %v1521_v46 = vadd.f32 %v1520_v22, %v1519_v20 }
0x1af9   :  { %v1522_v24 = vrot.slane %v1521_v46, 2 }
0x1afb   :  { %v1523_v25 = vadd.f32 %v1522_v24, %v1521_v46 }
0x1afd   :  { %v1524_v26 = vrot.slane %v1523_v25, 1 }
0x1aff   :  { %v1525_v27 = vadd.f32 %v1524_v26, %v1523_v25 }
0x1b01   :  { %1944 = vrcp.f32 %v1525_v27 }
0x1b0b   :  { %v1945_v17 = vpop.eup %1944 }
0x1b0c   :  { %v1527_v3 = vmul.f32 %v1945_v17, %v1519_v20 }
0x1b0e   :  { %1528 = vst [vmem:[%s2456_s3] sm:$0xff] %v1527_v3 }
0x1b0f   :  { %1533 = vsyncpa [#allocation3], 1 }

</bundles_post_ra>
